<compile_context>
chip_gen: v6e
topology: v6e:2x2x1
jax: 0.10.0
libtpu: 0.0.40
codegen_flags: <defaults>
</compile_context>

<pallas_src>
import jax
import jax.numpy as jnp
from jax.experimental import pallas as pl
from jax.experimental.pallas import tpu as pltpu

C_MID = 8  # hidden channels of each per-band sub-network (C_MID * W == 128 lanes)


def _metanet_kernel(x_ref, w1v_ref, b1v_ref, w2v_ref, b2_ref, o_ref):
    # x_ref  : (bands, H, C*W)  one sample's band images, tiled C times along lanes
    # w1v_ref: (bands, 9, C*W)  conv1 weights, broadcast per channel lane-block
    # b1v_ref: (bands, C*W)     conv1 bias, broadcast per channel lane-block
    # w2v_ref: (bands, 9, C*W)  conv2 weights, broadcast per channel lane-block
    # b2_ref : (bands,)         conv2 bias scalars (SMEM)
    # o_ref  : (bands, H, W)    output band images for this sample
    bands, H, CW = x_ref.shape
    W = o_ref.shape[-1]
    f32 = jnp.float32

    zrow = jnp.zeros((1, CW), f32)
    zcol = jnp.zeros((H, 1), f32)

    # The lane axis packs C channel copies of width W; a +/-1 lane shift leaks
    # across channel-block boundaries, so zero the invalid first/last column of
    # every W-block (this also covers the true image borders).
    col = jax.lax.broadcasted_iota(jnp.int32, (1, CW), 1) % W
    mask_l = (col >= 1).astype(f32)        # taps with dx == -1
    mask_r = (col <= W - 2).astype(f32)    # taps with dx == +1

    def conv3x3(a, wrows):
        # a: (H, C*W) lane-packed activations; wrows: (9, C*W) per-tap lane weights.
        # out[y, j] = sum_{ky,kx} wrows[ky*3+kx, j] * a[y+ky-1, j+kx-1]  (zero pad)
        acc = jnp.zeros((H, CW), f32)
        for ky in range(3):
            dy = ky - 1
            if dy == -1:
                ar = jnp.concatenate([zrow, a[:H - 1, :]], axis=0)
            elif dy == 1:
                ar = jnp.concatenate([a[1:, :], zrow], axis=0)
            else:
                ar = a
            for kx in range(3):
                dx = kx - 1
                if dx == -1:
                    s = jnp.concatenate([zcol, ar[:, :CW - 1]], axis=1) * mask_l
                elif dx == 1:
                    s = jnp.concatenate([ar[:, 1:], zcol], axis=1) * mask_r
                else:
                    s = ar
                t = ky * 3 + kx
                acc = acc + s * wrows[t:t + 1, :]
        return acc

    for b in range(bands):                                   # small static unroll
        xb = x_ref[b]                                        # (H, C*W) = (16, 128)
        # conv1 (1 -> C) + bias + ReLU, fully lane-packed.
        mid = jnp.maximum(conv3x3(xb, w1v_ref[b]) + b1v_ref[b:b + 1, :], 0.0)
        # conv2 (C -> 1): per-channel partial sums, still lane-packed.
        acc2 = conv3x3(mid, w2v_ref[b])

        # Reduce the C channel blocks along the lane axis: (H, C*W) -> (H, W).
        r = acc2
        half = CW // 2
        while half >= W:
            r = r[:, :half] + r[:, half:2 * half]
            half //= 2

        o_ref[b] = jnp.tanh(r + b2_ref[b]).astype(o_ref.dtype)


def metanet_forward(x, params):
    """x: (N, bands, H, W) f32.  params: per-band conv weights/biases."""
    w1, b1, w2, b2 = params
    N, bands, H, W = x.shape
    C = w1.shape[1]
    assert C > 0 and (C & (C - 1)) == 0, "C_MID must be a power of two (lane fold)"
    CW = C * W

    # Wrapper-side layout plumbing (lane-dense packing):
    #   x_t [n, b, y, c*W + j] = x[n, b, y, j]
    #   w1v [b, t, c*W + j]    = w1[b, c, 0, ky, kx]   with t = ky*3 + kx
    #   w2v [b, t, c*W + j]    = w2[b, 0, c, ky, kx]
    x_t = jnp.tile(x.astype(jnp.float32), (1, 1, 1, C))                    # (N, bands, H, C*W)
    w1v = jnp.repeat(jnp.transpose(w1.reshape(bands, C, 9), (0, 2, 1)),
                     W, axis=2).astype(jnp.float32)                        # (bands, 9, C*W)
    b1v = jnp.repeat(b1, W, axis=1).astype(jnp.float32)                    # (bands, C*W)
    w2v = jnp.repeat(jnp.transpose(w2.reshape(bands, C, 9), (0, 2, 1)),
                     W, axis=2).astype(jnp.float32)                        # (bands, 9, C*W)
    b2s = b2.reshape(bands).astype(jnp.float32)                            # (bands,) SMEM scalars

    return pl.pallas_call(
        _metanet_kernel,
        out_shape=jax.ShapeDtypeStruct((N, bands, H, W), jnp.float32),
        grid_spec=pltpu.PrefetchScalarGridSpec(
            num_scalar_prefetch=0,
            grid=(N,),
            in_specs=[
                pl.BlockSpec((None, bands, H, CW), lambda n: (n, 0, 0, 0)),
                pl.BlockSpec((bands, 9, CW), lambda n: (0, 0, 0)),
                pl.BlockSpec((bands, CW), lambda n: (0, 0)),
                pl.BlockSpec((bands, 9, CW), lambda n: (0, 0, 0)),
                pl.BlockSpec(memory_space=pltpu.MemorySpace.SMEM),
            ],
            out_specs=pl.BlockSpec((None, bands, H, W), lambda n: (n, 0, 0, 0)),
        ),
        compiler_params=pltpu.CompilerParams(
            dimension_semantics=("parallel",)),
    )(x_t, w1v, b1v, w2v, b2s)


def metanet_reference(x, params):
    """Pure-JAX reference of MetaNet.forward with the same sub-network config."""
    w1, b1, w2, b2 = params
    N, bands, H, W = x.shape
    outs = []
    for j in range(bands):
        xi = x[:, j:j + 1]                                  # (N, 1, H, W)
        h = jax.lax.conv_general_dilated(
            xi, w1[j], (1, 1), [(1, 1), (1, 1)],
            dimension_numbers=("NCHW", "OIHW", "NCHW"))
        h = jax.nn.relu(h + b1[j][None, :, None, None])
        o = jax.lax.conv_general_dilated(
            h, w2[j], (1, 1), [(1, 1), (1, 1)],
            dimension_numbers=("NCHW", "OIHW", "NCHW"))
        o = jnp.tanh(o + b2[j][None, :, None, None])
        outs.append(o[:, 0])                                # (N, H, W)
    return jnp.stack(outs, axis=1)                          # (N, bands, H, W)


if __name__ == "__main__":
    N, BANDS, H, W = 2, 3, 16, 16
    key = jax.random.PRNGKey(0)
    kx, k1, k2, k3, k4 = jax.random.split(key, 5)

    x = jax.random.normal(kx, (N, BANDS, H, W), jnp.float32)
    # Deterministic synthetic parameters (shapes follow nn.Conv2d in the stack).
    w1 = 0.2 * jax.random.normal(k1, (BANDS, C_MID, 1, 3, 3), jnp.float32)
    b1 = 0.1 * jax.random.normal(k2, (BANDS, C_MID), jnp.float32)
    w2 = 0.2 * jax.random.normal(k3, (BANDS, 1, C_MID, 3, 3), jnp.float32)
    b2 = 0.1 * jax.random.normal(k4, (BANDS, 1), jnp.float32)
    params = (w1, b1, w2, b2)

    out = jax.block_until_ready(metanet_forward(x, params))
    ref = metanet_reference(x, params)

    assert out.shape == x.shape and out.dtype == x.dtype
    assert jnp.allclose(out, ref, atol=1e-4, rtol=1e-4), float(
        jnp.max(jnp.abs(out - ref)))
    print("KERNEL_OK")
</pallas_src>

<mosaic_0001>
module attributes {stable_mosaic.version = 11 : i64} {
  func.func @_metanet_kernel(%arg0: i32, %arg1: memref<1x3x16x128xf32, #tpu.memory_space<vmem>>, %arg2: memref<3x9x128xf32, #tpu.memory_space<vmem>>, %arg3: memref<3x128xf32, #tpu.memory_space<vmem>>, %arg4: memref<3x9x128xf32, #tpu.memory_space<vmem>>, %arg5: memref<3xf32, #tpu.memory_space<smem>>, %arg6: memref<1x3x16x16xf32, #tpu.memory_space<vmem>>) attributes {dimension_semantics = [#tpu.dimension_semantics<parallel>], iteration_bounds = array<i64: 2>, scalar_prefetch = 0 : i64, scratch_operands = 0 : i64, tpu.core_type = #tpu.core_type<tc>, window_params = [{transform_indices = @transform_0, window_bounds = array<i64: 1, 3, 16, 128>}, {pipeline_mode = #tpu.pipeline_mode<synchronous>, transform_indices = @transform_1, window_bounds = array<i64: 3, 9, 128>}, {pipeline_mode = #tpu.pipeline_mode<synchronous>, transform_indices = @transform_2, window_bounds = array<i64: 3, 128>}, {pipeline_mode = #tpu.pipeline_mode<synchronous>, transform_indices = @transform_3, window_bounds = array<i64: 3, 9, 128>}, {transform_indices = @transform_4, window_bounds = array<i64: 3>}, {transform_indices = @transform_5, window_bounds = array<i64: 1, 3, 16, 16>}]} {
    %cst = arith.constant 0.000000e+00 : f32
    %0 = vector.broadcast %cst : f32 to vector<1x128xf32>
    %cst_0 = arith.constant 0.000000e+00 : f32
    %1 = vector.broadcast %cst_0 : f32 to vector<16x1xf32>
    %2 = tpu.iota {dimensions = array<i32: 1>} : vector<1x128xi32>
    %c16_i32 = arith.constant 16 : i32
    %c0_i32 = arith.constant 0 : i32
    %3 = arith.cmpi eq, %c16_i32, %c0_i32 : i32
    %c1_i32 = arith.constant 1 : i32
    %4 = arith.select %3, %c1_i32, %c16_i32 : i32
    %5 = vector.broadcast %4 : i32 to vector<1x128xi32>
    %6 = arith.remsi %2, %5 : vector<1x128xi32>
    %c0_i32_1 = arith.constant 0 : i32
    %7 = vector.broadcast %c0_i32_1 : i32 to vector<1x128xi32>
    %8 = arith.cmpi ne, %6, %7 : vector<1x128xi32>
    %c0_i32_2 = arith.constant 0 : i32
    %9 = vector.broadcast %c0_i32_2 : i32 to vector<1x128xi32>
    %10 = arith.cmpi slt, %6, %9 : vector<1x128xi32>
    %c0_i32_3 = arith.constant 0 : i32
    %11 = arith.cmpi slt, %4, %c0_i32_3 : i32
    %12 = vector.broadcast %11 : i1 to vector<1x128xi1>
    %13 = vector.broadcast %12 : vector<1x128xi1> to vector<1x128xi1>
    %14 = arith.xori %10, %13 : vector<1x128xi1>
    %15 = arith.andi %14, %8 : vector<1x128xi1>
    %16 = vector.broadcast %4 : i32 to vector<1x128xi32>
    %17 = arith.addi %6, %16 : vector<1x128xi32>
    %18 = arith.select %15, %17, %6 : vector<1x128xi1>, vector<1x128xi32>
    %c1_i32_4 = arith.constant 1 : i32
    %19 = vector.broadcast %c1_i32_4 : i32 to vector<1x128xi32>
    %20 = arith.cmpi sge, %18, %19 : vector<1x128xi32>
    %21 = arith.extui %20 : vector<1x128xi1> to vector<1x128xi32>
    %22 = arith.sitofp %21 : vector<1x128xi32> to vector<1x128xf32>
    %c14_i32 = arith.constant 14 : i32
    %23 = vector.broadcast %c14_i32 : i32 to vector<1x128xi32>
    %24 = arith.cmpi sle, %18, %23 : vector<1x128xi32>
    %25 = arith.extui %24 : vector<1x128xi1> to vector<1x128xi32>
    %26 = arith.sitofp %25 : vector<1x128xi32> to vector<1x128xf32>
    %c0 = arith.constant 0 : index
    %c0_5 = arith.constant 0 : index
    %c0_6 = arith.constant 0 : index
    %c0_7 = arith.constant 0 : index
    %27 = vector.load %arg1[%c0, %c0_5, %c0_6, %c0_7] : memref<1x3x16x128xf32, #tpu.memory_space<vmem>>, vector<1x1x16x128xf32>
    %28 = vector.shape_cast %27 : vector<1x1x16x128xf32> to vector<16x128xf32>
    %c0_8 = arith.constant 0 : index
    %c0_9 = arith.constant 0 : index
    %c0_10 = arith.constant 0 : index
    %29 = vector.load %arg2[%c0_8, %c0_9, %c0_10] : memref<3x9x128xf32, #tpu.memory_space<vmem>>, vector<1x9x128xf32>
    %30 = vector.shape_cast %29 : vector<1x9x128xf32> to vector<9x128xf32>
    %cst_11 = arith.constant 0.000000e+00 : f32
    %31 = vector.broadcast %cst_11 : f32 to vector<16x128xf32>
    %32 = vector.extract_strided_slice %28 {offsets = [0, 0], sizes = [15, 128], strides = [1, 1]} : vector<16x128xf32> to vector<15x128xf32>
    %33 = tpu.concatenate %0, %32 in 0 : vector<1x128xf32>, vector<15x128xf32> -> vector<16x128xf32>
    %34 = vector.extract_strided_slice %33 {offsets = [0, 0], sizes = [16, 127], strides = [1, 1]} : vector<16x128xf32> to vector<16x127xf32>
    %35 = tpu.concatenate %1, %34 in 1 : vector<16x1xf32>, vector<16x127xf32> -> vector<16x128xf32>
    %36 = vector.broadcast %22 : vector<1x128xf32> to vector<16x128xf32>
    %37 = arith.mulf %35, %36 : vector<16x128xf32>
    %38 = vector.extract_strided_slice %30 {offsets = [0, 0], sizes = [1, 128], strides = [1, 1]} : vector<9x128xf32> to vector<1x128xf32>
    %39 = vector.broadcast %38 : vector<1x128xf32> to vector<16x128xf32>
    %40 = arith.mulf %37, %39 : vector<16x128xf32>
    %41 = arith.addf %31, %40 : vector<16x128xf32>
    %42 = vector.extract_strided_slice %30 {offsets = [1, 0], sizes = [1, 128], strides = [1, 1]} : vector<9x128xf32> to vector<1x128xf32>
    %43 = vector.broadcast %42 : vector<1x128xf32> to vector<16x128xf32>
    %44 = arith.mulf %33, %43 : vector<16x128xf32>
    %45 = arith.addf %41, %44 : vector<16x128xf32>
    %46 = vector.extract_strided_slice %33 {offsets = [0, 1], sizes = [16, 127], strides = [1, 1]} : vector<16x128xf32> to vector<16x127xf32>
    %47 = tpu.concatenate %46, %1 in 1 : vector<16x127xf32>, vector<16x1xf32> -> vector<16x128xf32>
    %48 = vector.broadcast %26 : vector<1x128xf32> to vector<16x128xf32>
    %49 = arith.mulf %47, %48 : vector<16x128xf32>
    %50 = vector.extract_strided_slice %30 {offsets = [2, 0], sizes = [1, 128], strides = [1, 1]} : vector<9x128xf32> to vector<1x128xf32>
    %51 = vector.broadcast %50 : vector<1x128xf32> to vector<16x128xf32>
    %52 = arith.mulf %49, %51 : vector<16x128xf32>
    %53 = arith.addf %45, %52 : vector<16x128xf32>
    %54 = vector.extract_strided_slice %28 {offsets = [0, 0], sizes = [16, 127], strides = [1, 1]} : vector<16x128xf32> to vector<16x127xf32>
    %55 = tpu.concatenate %1, %54 in 1 : vector<16x1xf32>, vector<16x127xf32> -> vector<16x128xf32>
    %56 = vector.broadcast %22 : vector<1x128xf32> to vector<16x128xf32>
    %57 = arith.mulf %55, %56 : vector<16x128xf32>
    %58 = vector.extract_strided_slice %30 {offsets = [3, 0], sizes = [1, 128], strides = [1, 1]} : vector<9x128xf32> to vector<1x128xf32>
    %59 = vector.broadcast %58 : vector<1x128xf32> to vector<16x128xf32>
    %60 = arith.mulf %57, %59 : vector<16x128xf32>
    %61 = arith.addf %53, %60 : vector<16x128xf32>
    %62 = vector.extract_strided_slice %30 {offsets = [4, 0], sizes = [1, 128], strides = [1, 1]} : vector<9x128xf32> to vector<1x128xf32>
    %63 = vector.broadcast %62 : vector<1x128xf32> to vector<16x128xf32>
    %64 = arith.mulf %28, %63 : vector<16x128xf32>
    %65 = arith.addf %61, %64 : vector<16x128xf32>
    %66 = vector.extract_strided_slice %28 {offsets = [0, 1], sizes = [16, 127], strides = [1, 1]} : vector<16x128xf32> to vector<16x127xf32>
    %67 = tpu.concatenate %66, %1 in 1 : vector<16x127xf32>, vector<16x1xf32> -> vector<16x128xf32>
    %68 = vector.broadcast %26 : vector<1x128xf32> to vector<16x128xf32>
    %69 = arith.mulf %67, %68 : vector<16x128xf32>
    %70 = vector.extract_strided_slice %30 {offsets = [5, 0], sizes = [1, 128], strides = [1, 1]} : vector<9x128xf32> to vector<1x128xf32>
    %71 = vector.broadcast %70 : vector<1x128xf32> to vector<16x128xf32>
    %72 = arith.mulf %69, %71 : vector<16x128xf32>
    %73 = arith.addf %65, %72 : vector<16x128xf32>
    %74 = vector.extract_strided_slice %28 {offsets = [1, 0], sizes = [15, 128], strides = [1, 1]} : vector<16x128xf32> to vector<15x128xf32>
    %75 = tpu.concatenate %74, %0 in 0 : vector<15x128xf32>, vector<1x128xf32> -> vector<16x128xf32>
    %76 = vector.extract_strided_slice %75 {offsets = [0, 0], sizes = [16, 127], strides = [1, 1]} : vector<16x128xf32> to vector<16x127xf32>
    %77 = tpu.concatenate %1, %76 in 1 : vector<16x1xf32>, vector<16x127xf32> -> vector<16x128xf32>
    %78 = vector.broadcast %22 : vector<1x128xf32> to vector<16x128xf32>
    %79 = arith.mulf %77, %78 : vector<16x128xf32>
    %80 = vector.extract_strided_slice %30 {offsets = [6, 0], sizes = [1, 128], strides = [1, 1]} : vector<9x128xf32> to vector<1x128xf32>
    %81 = vector.broadcast %80 : vector<1x128xf32> to vector<16x128xf32>
    %82 = arith.mulf %79, %81 : vector<16x128xf32>
    %83 = arith.addf %73, %82 : vector<16x128xf32>
    %84 = vector.extract_strided_slice %30 {offsets = [7, 0], sizes = [1, 128], strides = [1, 1]} : vector<9x128xf32> to vector<1x128xf32>
    %85 = vector.broadcast %84 : vector<1x128xf32> to vector<16x128xf32>
    %86 = arith.mulf %75, %85 : vector<16x128xf32>
    %87 = arith.addf %83, %86 : vector<16x128xf32>
    %88 = vector.extract_strided_slice %75 {offsets = [0, 1], sizes = [16, 127], strides = [1, 1]} : vector<16x128xf32> to vector<16x127xf32>
    %89 = tpu.concatenate %88, %1 in 1 : vector<16x127xf32>, vector<16x1xf32> -> vector<16x128xf32>
    %90 = vector.broadcast %26 : vector<1x128xf32> to vector<16x128xf32>
    %91 = arith.mulf %89, %90 : vector<16x128xf32>
    %92 = vector.extract_strided_slice %30 {offsets = [8, 0], sizes = [1, 128], strides = [1, 1]} : vector<9x128xf32> to vector<1x128xf32>
    %93 = vector.broadcast %92 : vector<1x128xf32> to vector<16x128xf32>
    %94 = arith.mulf %91, %93 : vector<16x128xf32>
    %95 = arith.addf %87, %94 : vector<16x128xf32>
    %c0_12 = arith.constant 0 : index
    %c0_13 = arith.constant 0 : index
    %96 = vector.load %arg3[%c0_12, %c0_13] : memref<3x128xf32, #tpu.memory_space<vmem>>, vector<1x128xf32>
    %97 = vector.broadcast %96 : vector<1x128xf32> to vector<16x128xf32>
    %98 = arith.addf %95, %97 : vector<16x128xf32>
    %cst_14 = arith.constant 0.000000e+00 : f32
    %99 = vector.broadcast %cst_14 : f32 to vector<16x128xf32>
    %100 = arith.maximumf %98, %99 : vector<16x128xf32>
    %c0_15 = arith.constant 0 : index
    %c0_16 = arith.constant 0 : index
    %c0_17 = arith.constant 0 : index
    %101 = vector.load %arg4[%c0_15, %c0_16, %c0_17] : memref<3x9x128xf32, #tpu.memory_space<vmem>>, vector<1x9x128xf32>
    %102 = vector.shape_cast %101 : vector<1x9x128xf32> to vector<9x128xf32>
    %cst_18 = arith.constant 0.000000e+00 : f32
    %103 = vector.broadcast %cst_18 : f32 to vector<16x128xf32>
    %104 = vector.extract_strided_slice %100 {offsets = [0, 0], sizes = [15, 128], strides = [1, 1]} : vector<16x128xf32> to vector<15x128xf32>
    %105 = tpu.concatenate %0, %104 in 0 : vector<1x128xf32>, vector<15x128xf32> -> vector<16x128xf32>
    %106 = vector.extract_strided_slice %105 {offsets = [0, 0], sizes = [16, 127], strides = [1, 1]} : vector<16x128xf32> to vector<16x127xf32>
    %107 = tpu.concatenate %1, %106 in 1 : vector<16x1xf32>, vector<16x127xf32> -> vector<16x128xf32>
    %108 = vector.broadcast %22 : vector<1x128xf32> to vector<16x128xf32>
    %109 = arith.mulf %107, %108 : vector<16x128xf32>
    %110 = vector.extract_strided_slice %102 {offsets = [0, 0], sizes = [1, 128], strides = [1, 1]} : vector<9x128xf32> to vector<1x128xf32>
    %111 = vector.broadcast %110 : vector<1x128xf32> to vector<16x128xf32>
    %112 = arith.mulf %109, %111 : vector<16x128xf32>
    %113 = arith.addf %103, %112 : vector<16x128xf32>
    %114 = vector.extract_strided_slice %102 {offsets = [1, 0], sizes = [1, 128], strides = [1, 1]} : vector<9x128xf32> to vector<1x128xf32>
    %115 = vector.broadcast %114 : vector<1x128xf32> to vector<16x128xf32>
    %116 = arith.mulf %105, %115 : vector<16x128xf32>
    %117 = arith.addf %113, %116 : vector<16x128xf32>
    %118 = vector.extract_strided_slice %105 {offsets = [0, 1], sizes = [16, 127], strides = [1, 1]} : vector<16x128xf32> to vector<16x127xf32>
    %119 = tpu.concatenate %118, %1 in 1 : vector<16x127xf32>, vector<16x1xf32> -> vector<16x128xf32>
    %120 = vector.broadcast %26 : vector<1x128xf32> to vector<16x128xf32>
    %121 = arith.mulf %119, %120 : vector<16x128xf32>
    %122 = vector.extract_strided_slice %102 {offsets = [2, 0], sizes = [1, 128], strides = [1, 1]} : vector<9x128xf32> to vector<1x128xf32>
    %123 = vector.broadcast %122 : vector<1x128xf32> to vector<16x128xf32>
    %124 = arith.mulf %121, %123 : vector<16x128xf32>
    %125 = arith.addf %117, %124 : vector<16x128xf32>
    %126 = vector.extract_strided_slice %100 {offsets = [0, 0], sizes = [16, 127], strides = [1, 1]} : vector<16x128xf32> to vector<16x127xf32>
    %127 = tpu.concatenate %1, %126 in 1 : vector<16x1xf32>, vector<16x127xf32> -> vector<16x128xf32>
    %128 = vector.broadcast %22 : vector<1x128xf32> to vector<16x128xf32>
    %129 = arith.mulf %127, %128 : vector<16x128xf32>
    %130 = vector.extract_strided_slice %102 {offsets = [3, 0], sizes = [1, 128], strides = [1, 1]} : vector<9x128xf32> to vector<1x128xf32>
    %131 = vector.broadcast %130 : vector<1x128xf32> to vector<16x128xf32>
    %132 = arith.mulf %129, %131 : vector<16x128xf32>
    %133 = arith.addf %125, %132 : vector<16x128xf32>
    %134 = vector.extract_strided_slice %102 {offsets = [4, 0], sizes = [1, 128], strides = [1, 1]} : vector<9x128xf32> to vector<1x128xf32>
    %135 = vector.broadcast %134 : vector<1x128xf32> to vector<16x128xf32>
    %136 = arith.mulf %100, %135 : vector<16x128xf32>
    %137 = arith.addf %133, %136 : vector<16x128xf32>
    %138 = vector.extract_strided_slice %100 {offsets = [0, 1], sizes = [16, 127], strides = [1, 1]} : vector<16x128xf32> to vector<16x127xf32>
    %139 = tpu.concatenate %138, %1 in 1 : vector<16x127xf32>, vector<16x1xf32> -> vector<16x128xf32>
    %140 = vector.broadcast %26 : vector<1x128xf32> to vector<16x128xf32>
    %141 = arith.mulf %139, %140 : vector<16x128xf32>
    %142 = vector.extract_strided_slice %102 {offsets = [5, 0], sizes = [1, 128], strides = [1, 1]} : vector<9x128xf32> to vector<1x128xf32>
    %143 = vector.broadcast %142 : vector<1x128xf32> to vector<16x128xf32>
    %144 = arith.mulf %141, %143 : vector<16x128xf32>
    %145 = arith.addf %137, %144 : vector<16x128xf32>
    %146 = vector.extract_strided_slice %100 {offsets = [1, 0], sizes = [15, 128], strides = [1, 1]} : vector<16x128xf32> to vector<15x128xf32>
    %147 = tpu.concatenate %146, %0 in 0 : vector<15x128xf32>, vector<1x128xf32> -> vector<16x128xf32>
    %148 = vector.extract_strided_slice %147 {offsets = [0, 0], sizes = [16, 127], strides = [1, 1]} : vector<16x128xf32> to vector<16x127xf32>
    %149 = tpu.concatenate %1, %148 in 1 : vector<16x1xf32>, vector<16x127xf32> -> vector<16x128xf32>
    %150 = vector.broadcast %22 : vector<1x128xf32> to vector<16x128xf32>
    %151 = arith.mulf %149, %150 : vector<16x128xf32>
    %152 = vector.extract_strided_slice %102 {offsets = [6, 0], sizes = [1, 128], strides = [1, 1]} : vector<9x128xf32> to vector<1x128xf32>
    %153 = vector.broadcast %152 : vector<1x128xf32> to vector<16x128xf32>
    %154 = arith.mulf %151, %153 : vector<16x128xf32>
    %155 = arith.addf %145, %154 : vector<16x128xf32>
    %156 = vector.extract_strided_slice %102 {offsets = [7, 0], sizes = [1, 128], strides = [1, 1]} : vector<9x128xf32> to vector<1x128xf32>
    %157 = vector.broadcast %156 : vector<1x128xf32> to vector<16x128xf32>
    %158 = arith.mulf %147, %157 : vector<16x128xf32>
    %159 = arith.addf %155, %158 : vector<16x128xf32>
    %160 = vector.extract_strided_slice %147 {offsets = [0, 1], sizes = [16, 127], strides = [1, 1]} : vector<16x128xf32> to vector<16x127xf32>
    %161 = tpu.concatenate %160, %1 in 1 : vector<16x127xf32>, vector<16x1xf32> -> vector<16x128xf32>
    %162 = vector.broadcast %26 : vector<1x128xf32> to vector<16x128xf32>
    %163 = arith.mulf %161, %162 : vector<16x128xf32>
    %164 = vector.extract_strided_slice %102 {offsets = [8, 0], sizes = [1, 128], strides = [1, 1]} : vector<9x128xf32> to vector<1x128xf32>
    %165 = vector.broadcast %164 : vector<1x128xf32> to vector<16x128xf32>
    %166 = arith.mulf %163, %165 : vector<16x128xf32>
    %167 = arith.addf %159, %166 : vector<16x128xf32>
    %168 = vector.extract_strided_slice %167 {offsets = [0, 0], sizes = [16, 64], strides = [1, 1]} : vector<16x128xf32> to vector<16x64xf32>
    %169 = vector.extract_strided_slice %167 {offsets = [0, 64], sizes = [16, 64], strides = [1, 1]} : vector<16x128xf32> to vector<16x64xf32>
    %170 = arith.addf %168, %169 : vector<16x64xf32>
    %171 = vector.extract_strided_slice %170 {offsets = [0, 0], sizes = [16, 32], strides = [1, 1]} : vector<16x64xf32> to vector<16x32xf32>
    %172 = vector.extract_strided_slice %170 {offsets = [0, 32], sizes = [16, 32], strides = [1, 1]} : vector<16x64xf32> to vector<16x32xf32>
    %173 = arith.addf %171, %172 : vector<16x32xf32>
    %174 = vector.extract_strided_slice %173 {offsets = [0, 0], sizes = [16, 16], strides = [1, 1]} : vector<16x32xf32> to vector<16x16xf32>
    %175 = vector.extract_strided_slice %173 {offsets = [0, 16], sizes = [16, 16], strides = [1, 1]} : vector<16x32xf32> to vector<16x16xf32>
    %176 = arith.addf %174, %175 : vector<16x16xf32>
    %c0_19 = arith.constant 0 : index
    %177 = memref.load %arg5[%c0_19] : memref<3xf32, #tpu.memory_space<smem>>
    %178 = vector.broadcast %177 : f32 to vector<16x16xf32>
    %179 = arith.addf %176, %178 : vector<16x16xf32>
    %180 = math.tanh %179 : vector<16x16xf32>
    %c0_20 = arith.constant 0 : index
    %c0_21 = arith.constant 0 : index
    %c0_22 = arith.constant 0 : index
    %c0_23 = arith.constant 0 : index
    %181 = vector.load %arg6[%c0_20, %c0_21, %c0_22, %c0_23] : memref<1x3x16x16xf32, #tpu.memory_space<vmem>>, vector<1x1x16x16xf32>
    %182 = vector.shape_cast %181 : vector<1x1x16x16xf32> to vector<16x16xf32>
    %183 = vector.shape_cast %180 : vector<16x16xf32> to vector<1x1x16x16xf32>
    tpu.vector_store %arg6[%c0_20, %c0_21, %c0_22, %c0_23], %183 {strides = array<i32>} : memref<1x3x16x16xf32, #tpu.memory_space<vmem>>, vector<1x1x16x16xf32>,
    %c0_24 = arith.constant 0 : index
    %c1 = arith.constant 1 : index
    %c0_25 = arith.constant 0 : index
    %c0_26 = arith.constant 0 : index
    %184 = vector.load %arg1[%c0_24, %c1, %c0_25, %c0_26] : memref<1x3x16x128xf32, #tpu.memory_space<vmem>>, vector<1x1x16x128xf32>
    %185 = vector.shape_cast %184 : vector<1x1x16x128xf32> to vector<16x128xf32>
    %c1_27 = arith.constant 1 : index
    %c0_28 = arith.constant 0 : index
    %c0_29 = arith.constant 0 : index
    %186 = vector.load %arg2[%c1_27, %c0_28, %c0_29] : memref<3x9x128xf32, #tpu.memory_space<vmem>>, vector<1x9x128xf32>
    %187 = vector.shape_cast %186 : vector<1x9x128xf32> to vector<9x128xf32>
    %cst_30 = arith.constant 0.000000e+00 : f32
    %188 = vector.broadcast %cst_30 : f32 to vector<16x128xf32>
    %189 = vector.extract_strided_slice %185 {offsets = [0, 0], sizes = [15, 128], strides = [1, 1]} : vector<16x128xf32> to vector<15x128xf32>
    %190 = tpu.concatenate %0, %189 in 0 : vector<1x128xf32>, vector<15x128xf32> -> vector<16x128xf32>
    %191 = vector.extract_strided_slice %190 {offsets = [0, 0], sizes = [16, 127], strides = [1, 1]} : vector<16x128xf32> to vector<16x127xf32>
    %192 = tpu.concatenate %1, %191 in 1 : vector<16x1xf32>, vector<16x127xf32> -> vector<16x128xf32>
    %193 = vector.broadcast %22 : vector<1x128xf32> to vector<16x128xf32>
    %194 = arith.mulf %192, %193 : vector<16x128xf32>
    %195 = vector.extract_strided_slice %187 {offsets = [0, 0], sizes = [1, 128], strides = [1, 1]} : vector<9x128xf32> to vector<1x128xf32>
    %196 = vector.broadcast %195 : vector<1x128xf32> to vector<16x128xf32>
    %197 = arith.mulf %194, %196 : vector<16x128xf32>
    %198 = arith.addf %188, %197 : vector<16x128xf32>
    %199 = vector.extract_strided_slice %187 {offsets = [1, 0], sizes = [1, 128], strides = [1, 1]} : vector<9x128xf32> to vector<1x128xf32>
    %200 = vector.broadcast %199 : vector<1x128xf32> to vector<16x128xf32>
    %201 = arith.mulf %190, %200 : vector<16x128xf32>
    %202 = arith.addf %198, %201 : vector<16x128xf32>
    %203 = vector.extract_strided_slice %190 {offsets = [0, 1], sizes = [16, 127], strides = [1, 1]} : vector<16x128xf32> to vector<16x127xf32>
    %204 = tpu.concatenate %203, %1 in 1 : vector<16x127xf32>, vector<16x1xf32> -> vector<16x128xf32>
    %205 = vector.broadcast %26 : vector<1x128xf32> to vector<16x128xf32>
    %206 = arith.mulf %204, %205 : vector<16x128xf32>
    %207 = vector.extract_strided_slice %187 {offsets = [2, 0], sizes = [1, 128], strides = [1, 1]} : vector<9x128xf32> to vector<1x128xf32>
    %208 = vector.broadcast %207 : vector<1x128xf32> to vector<16x128xf32>
    %209 = arith.mulf %206, %208 : vector<16x128xf32>
    %210 = arith.addf %202, %209 : vector<16x128xf32>
    %211 = vector.extract_strided_slice %185 {offsets = [0, 0], sizes = [16, 127], strides = [1, 1]} : vector<16x128xf32> to vector<16x127xf32>
    %212 = tpu.concatenate %1, %211 in 1 : vector<16x1xf32>, vector<16x127xf32> -> vector<16x128xf32>
    %213 = vector.broadcast %22 : vector<1x128xf32> to vector<16x128xf32>
    %214 = arith.mulf %212, %213 : vector<16x128xf32>
    %215 = vector.extract_strided_slice %187 {offsets = [3, 0], sizes = [1, 128], strides = [1, 1]} : vector<9x128xf32> to vector<1x128xf32>
    %216 = vector.broadcast %215 : vector<1x128xf32> to vector<16x128xf32>
    %217 = arith.mulf %214, %216 : vector<16x128xf32>
    %218 = arith.addf %210, %217 : vector<16x128xf32>
    %219 = vector.extract_strided_slice %187 {offsets = [4, 0], sizes = [1, 128], strides = [1, 1]} : vector<9x128xf32> to vector<1x128xf32>
    %220 = vector.broadcast %219 : vector<1x128xf32> to vector<16x128xf32>
    %221 = arith.mulf %185, %220 : vector<16x128xf32>
    %222 = arith.addf %218, %221 : vector<16x128xf32>
    %223 = vector.extract_strided_slice %185 {offsets = [0, 1], sizes = [16, 127], strides = [1, 1]} : vector<16x128xf32> to vector<16x127xf32>
    %224 = tpu.concatenate %223, %1 in 1 : vector<16x127xf32>, vector<16x1xf32> -> vector<16x128xf32>
    %225 = vector.broadcast %26 : vector<1x128xf32> to vector<16x128xf32>
    %226 = arith.mulf %224, %225 : vector<16x128xf32>
    %227 = vector.extract_strided_slice %187 {offsets = [5, 0], sizes = [1, 128], strides = [1, 1]} : vector<9x128xf32> to vector<1x128xf32>
    %228 = vector.broadcast %227 : vector<1x128xf32> to vector<16x128xf32>
    %229 = arith.mulf %226, %228 : vector<16x128xf32>
    %230 = arith.addf %222, %229 : vector<16x128xf32>
    %231 = vector.extract_strided_slice %185 {offsets = [1, 0], sizes = [15, 128], strides = [1, 1]} : vector<16x128xf32> to vector<15x128xf32>
    %232 = tpu.concatenate %231, %0 in 0 : vector<15x128xf32>, vector<1x128xf32> -> vector<16x128xf32>
    %233 = vector.extract_strided_slice %232 {offsets = [0, 0], sizes = [16, 127], strides = [1, 1]} : vector<16x128xf32> to vector<16x127xf32>
    %234 = tpu.concatenate %1, %233 in 1 : vector<16x1xf32>, vector<16x127xf32> -> vector<16x128xf32>
    %235 = vector.broadcast %22 : vector<1x128xf32> to vector<16x128xf32>
    %236 = arith.mulf %234, %235 : vector<16x128xf32>
    %237 = vector.extract_strided_slice %187 {offsets = [6, 0], sizes = [1, 128], strides = [1, 1]} : vector<9x128xf32> to vector<1x128xf32>
    %238 = vector.broadcast %237 : vector<1x128xf32> to vector<16x128xf32>
    %239 = arith.mulf %236, %238 : vector<16x128xf32>
    %240 = arith.addf %230, %239 : vector<16x128xf32>
    %241 = vector.extract_strided_slice %187 {offsets = [7, 0], sizes = [1, 128], strides = [1, 1]} : vector<9x128xf32> to vector<1x128xf32>
    %242 = vector.broadcast %241 : vector<1x128xf32> to vector<16x128xf32>
    %243 = arith.mulf %232, %242 : vector<16x128xf32>
    %244 = arith.addf %240, %243 : vector<16x128xf32>
    %245 = vector.extract_strided_slice %232 {offsets = [0, 1], sizes = [16, 127], strides = [1, 1]} : vector<16x128xf32> to vector<16x127xf32>
    %246 = tpu.concatenate %245, %1 in 1 : vector<16x127xf32>, vector<16x1xf32> -> vector<16x128xf32>
    %247 = vector.broadcast %26 : vector<1x128xf32> to vector<16x128xf32>
    %248 = arith.mulf %246, %247 : vector<16x128xf32>
    %249 = vector.extract_strided_slice %187 {offsets = [8, 0], sizes = [1, 128], strides = [1, 1]} : vector<9x128xf32> to vector<1x128xf32>
    %250 = vector.broadcast %249 : vector<1x128xf32> to vector<16x128xf32>
    %251 = arith.mulf %248, %250 : vector<16x128xf32>
    %252 = arith.addf %244, %251 : vector<16x128xf32>
    %c1_31 = arith.constant 1 : index
    %c0_32 = arith.constant 0 : index
    %253 = vector.load %arg3[%c1_31, %c0_32] : memref<3x128xf32, #tpu.memory_space<vmem>>, vector<1x128xf32>
    %254 = vector.broadcast %253 : vector<1x128xf32> to vector<16x128xf32>
    %255 = arith.addf %252, %254 : vector<16x128xf32>
    %cst_33 = arith.constant 0.000000e+00 : f32
    %256 = vector.broadcast %cst_33 : f32 to vector<16x128xf32>
    %257 = arith.maximumf %255, %256 : vector<16x128xf32>
    %c1_34 = arith.constant 1 : index
    %c0_35 = arith.constant 0 : index
    %c0_36 = arith.constant 0 : index
    %258 = vector.load %arg4[%c1_34, %c0_35, %c0_36] : memref<3x9x128xf32, #tpu.memory_space<vmem>>, vector<1x9x128xf32>
    %259 = vector.shape_cast %258 : vector<1x9x128xf32> to vector<9x128xf32>
    %cst_37 = arith.constant 0.000000e+00 : f32
    %260 = vector.broadcast %cst_37 : f32 to vector<16x128xf32>
    %261 = vector.extract_strided_slice %257 {offsets = [0, 0], sizes = [15, 128], strides = [1, 1]} : vector<16x128xf32> to vector<15x128xf32>
    %262 = tpu.concatenate %0, %261 in 0 : vector<1x128xf32>, vector<15x128xf32> -> vector<16x128xf32>
    %263 = vector.extract_strided_slice %262 {offsets = [0, 0], sizes = [16, 127], strides = [1, 1]} : vector<16x128xf32> to vector<16x127xf32>
    %264 = tpu.concatenate %1, %263 in 1 : vector<16x1xf32>, vector<16x127xf32> -> vector<16x128xf32>
    %265 = vector.broadcast %22 : vector<1x128xf32> to vector<16x128xf32>
    %266 = arith.mulf %264, %265 : vector<16x128xf32>
    %267 = vector.extract_strided_slice %259 {offsets = [0, 0], sizes = [1, 128], strides = [1, 1]} : vector<9x128xf32> to vector<1x128xf32>
    %268 = vector.broadcast %267 : vector<1x128xf32> to vector<16x128xf32>
    %269 = arith.mulf %266, %268 : vector<16x128xf32>
    %270 = arith.addf %260, %269 : vector<16x128xf32>
    %271 = vector.extract_strided_slice %259 {offsets = [1, 0], sizes = [1, 128], strides = [1, 1]} : vector<9x128xf32> to vector<1x128xf32>
    %272 = vector.broadcast %271 : vector<1x128xf32> to vector<16x128xf32>
    %273 = arith.mulf %262, %272 : vector<16x128xf32>
    %274 = arith.addf %270, %273 : vector<16x128xf32>
    %275 = vector.extract_strided_slice %262 {offsets = [0, 1], sizes = [16, 127], strides = [1, 1]} : vector<16x128xf32> to vector<16x127xf32>
    %276 = tpu.concatenate %275, %1 in 1 : vector<16x127xf32>, vector<16x1xf32> -> vector<16x128xf32>
    %277 = vector.broadcast %26 : vector<1x128xf32> to vector<16x128xf32>
    %278 = arith.mulf %276, %277 : vector<16x128xf32>
    %279 = vector.extract_strided_slice %259 {offsets = [2, 0], sizes = [1, 128], strides = [1, 1]} : vector<9x128xf32> to vector<1x128xf32>
    %280 = vector.broadcast %279 : vector<1x128xf32> to vector<16x128xf32>
    %281 = arith.mulf %278, %280 : vector<16x128xf32>
    %282 = arith.addf %274, %281 : vector<16x128xf32>
    %283 = vector.extract_strided_slice %257 {offsets = [0, 0], sizes = [16, 127], strides = [1, 1]} : vector<16x128xf32> to vector<16x127xf32>
    %284 = tpu.concatenate %1, %283 in 1 : vector<16x1xf32>, vector<16x127xf32> -> vector<16x128xf32>
    %285 = vector.broadcast %22 : vector<1x128xf32> to vector<16x128xf32>
    %286 = arith.mulf %284, %285 : vector<16x128xf32>
    %287 = vector.extract_strided_slice %259 {offsets = [3, 0], sizes = [1, 128], strides = [1, 1]} : vector<9x128xf32> to vector<1x128xf32>
    %288 = vector.broadcast %287 : vector<1x128xf32> to vector<16x128xf32>
    %289 = arith.mulf %286, %288 : vector<16x128xf32>
    %290 = arith.addf %282, %289 : vector<16x128xf32>
    %291 = vector.extract_strided_slice %259 {offsets = [4, 0], sizes = [1, 128], strides = [1, 1]} : vector<9x128xf32> to vector<1x128xf32>
    %292 = vector.broadcast %291 : vector<1x128xf32> to vector<16x128xf32>
    %293 = arith.mulf %257, %292 : vector<16x128xf32>
    %294 = arith.addf %290, %293 : vector<16x128xf32>
    %295 = vector.extract_strided_slice %257 {offsets = [0, 1], sizes = [16, 127], strides = [1, 1]} : vector<16x128xf32> to vector<16x127xf32>
    %296 = tpu.concatenate %295, %1 in 1 : vector<16x127xf32>, vector<16x1xf32> -> vector<16x128xf32>
    %297 = vector.broadcast %26 : vector<1x128xf32> to vector<16x128xf32>
    %298 = arith.mulf %296, %297 : vector<16x128xf32>
    %299 = vector.extract_strided_slice %259 {offsets = [5, 0], sizes = [1, 128], strides = [1, 1]} : vector<9x128xf32> to vector<1x128xf32>
    %300 = vector.broadcast %299 : vector<1x128xf32> to vector<16x128xf32>
    %301 = arith.mulf %298, %300 : vector<16x128xf32>
    %302 = arith.addf %294, %301 : vector<16x128xf32>
    %303 = vector.extract_strided_slice %257 {offsets = [1, 0], sizes = [15, 128], strides = [1, 1]} : vector<16x128xf32> to vector<15x128xf32>
    %304 = tpu.concatenate %303, %0 in 0 : vector<15x128xf32>, vector<1x128xf32> -> vector<16x128xf32>
    %305 = vector.extract_strided_slice %304 {offsets = [0, 0], sizes = [16, 127], strides = [1, 1]} : vector<16x128xf32> to vector<16x127xf32>
    %306 = tpu.concatenate %1, %305 in 1 : vector<16x1xf32>, vector<16x127xf32> -> vector<16x128xf32>
    %307 = vector.broadcast %22 : vector<1x128xf32> to vector<16x128xf32>
    %308 = arith.mulf %306, %307 : vector<16x128xf32>
    %309 = vector.extract_strided_slice %259 {offsets = [6, 0], sizes = [1, 128], strides = [1, 1]} : vector<9x128xf32> to vector<1x128xf32>
    %310 = vector.broadcast %309 : vector<1x128xf32> to vector<16x128xf32>
    %311 = arith.mulf %308, %310 : vector<16x128xf32>
    %312 = arith.addf %302, %311 : vector<16x128xf32>
    %313 = vector.extract_strided_slice %259 {offsets = [7, 0], sizes = [1, 128], strides = [1, 1]} : vector<9x128xf32> to vector<1x128xf32>
    %314 = vector.broadcast %313 : vector<1x128xf32> to vector<16x128xf32>
    %315 = arith.mulf %304, %314 : vector<16x128xf32>
    %316 = arith.addf %312, %315 : vector<16x128xf32>
    %317 = vector.extract_strided_slice %304 {offsets = [0, 1], sizes = [16, 127], strides = [1, 1]} : vector<16x128xf32> to vector<16x127xf32>
    %318 = tpu.concatenate %317, %1 in 1 : vector<16x127xf32>, vector<16x1xf32> -> vector<16x128xf32>
    %319 = vector.broadcast %26 : vector<1x128xf32> to vector<16x128xf32>
    %320 = arith.mulf %318, %319 : vector<16x128xf32>
    %321 = vector.extract_strided_slice %259 {offsets = [8, 0], sizes = [1, 128], strides = [1, 1]} : vector<9x128xf32> to vector<1x128xf32>
    %322 = vector.broadcast %321 : vector<1x128xf32> to vector<16x128xf32>
    %323 = arith.mulf %320, %322 : vector<16x128xf32>
    %324 = arith.addf %316, %323 : vector<16x128xf32>
    %325 = vector.extract_strided_slice %324 {offsets = [0, 0], sizes = [16, 64], strides = [1, 1]} : vector<16x128xf32> to vector<16x64xf32>
    %326 = vector.extract_strided_slice %324 {offsets = [0, 64], sizes = [16, 64], strides = [1, 1]} : vector<16x128xf32> to vector<16x64xf32>
    %327 = arith.addf %325, %326 : vector<16x64xf32>
    %328 = vector.extract_strided_slice %327 {offsets = [0, 0], sizes = [16, 32], strides = [1, 1]} : vector<16x64xf32> to vector<16x32xf32>
    %329 = vector.extract_strided_slice %327 {offsets = [0, 32], sizes = [16, 32], strides = [1, 1]} : vector<16x64xf32> to vector<16x32xf32>
    %330 = arith.addf %328, %329 : vector<16x32xf32>
    %331 = vector.extract_strided_slice %330 {offsets = [0, 0], sizes = [16, 16], strides = [1, 1]} : vector<16x32xf32> to vector<16x16xf32>
    %332 = vector.extract_strided_slice %330 {offsets = [0, 16], sizes = [16, 16], strides = [1, 1]} : vector<16x32xf32> to vector<16x16xf32>
    %333 = arith.addf %331, %332 : vector<16x16xf32>
    %c1_38 = arith.constant 1 : index
    %334 = memref.load %arg5[%c1_38] : memref<3xf32, #tpu.memory_space<smem>>
    %335 = vector.broadcast %334 : f32 to vector<16x16xf32>
    %336 = arith.addf %333, %335 : vector<16x16xf32>
    %337 = math.tanh %336 : vector<16x16xf32>
    %c0_39 = arith.constant 0 : index
    %c1_40 = arith.constant 1 : index
    %c0_41 = arith.constant 0 : index
    %c0_42 = arith.constant 0 : index
    %338 = vector.load %arg6[%c0_39, %c1_40, %c0_41, %c0_42] : memref<1x3x16x16xf32, #tpu.memory_space<vmem>>, vector<1x1x16x16xf32>
    %339 = vector.shape_cast %338 : vector<1x1x16x16xf32> to vector<16x16xf32>
    %340 = vector.shape_cast %337 : vector<16x16xf32> to vector<1x1x16x16xf32>
    tpu.vector_store %arg6[%c0_39, %c1_40, %c0_41, %c0_42], %340 {strides = array<i32>} : memref<1x3x16x16xf32, #tpu.memory_space<vmem>>, vector<1x1x16x16xf32>,
    %c0_43 = arith.constant 0 : index
    %c2 = arith.constant 2 : index
    %c0_44 = arith.constant 0 : index
    %c0_45 = arith.constant 0 : index
    %341 = vector.load %arg1[%c0_43, %c2, %c0_44, %c0_45] : memref<1x3x16x128xf32, #tpu.memory_space<vmem>>, vector<1x1x16x128xf32>
    %342 = vector.shape_cast %341 : vector<1x1x16x128xf32> to vector<16x128xf32>
    %c2_46 = arith.constant 2 : index
    %c0_47 = arith.constant 0 : index
    %c0_48 = arith.constant 0 : index
    %343 = vector.load %arg2[%c2_46, %c0_47, %c0_48] : memref<3x9x128xf32, #tpu.memory_space<vmem>>, vector<1x9x128xf32>
    %344 = vector.shape_cast %343 : vector<1x9x128xf32> to vector<9x128xf32>
    %cst_49 = arith.constant 0.000000e+00 : f32
    %345 = vector.broadcast %cst_49 : f32 to vector<16x128xf32>
    %346 = vector.extract_strided_slice %342 {offsets = [0, 0], sizes = [15, 128], strides = [1, 1]} : vector<16x128xf32> to vector<15x128xf32>
    %347 = tpu.concatenate %0, %346 in 0 : vector<1x128xf32>, vector<15x128xf32> -> vector<16x128xf32>
    %348 = vector.extract_strided_slice %347 {offsets = [0, 0], sizes = [16, 127], strides = [1, 1]} : vector<16x128xf32> to vector<16x127xf32>
    %349 = tpu.concatenate %1, %348 in 1 : vector<16x1xf32>, vector<16x127xf32> -> vector<16x128xf32>
    %350 = vector.broadcast %22 : vector<1x128xf32> to vector<16x128xf32>
    %351 = arith.mulf %349, %350 : vector<16x128xf32>
    %352 = vector.extract_strided_slice %344 {offsets = [0, 0], sizes = [1, 128], strides = [1, 1]} : vector<9x128xf32> to vector<1x128xf32>
    %353 = vector.broadcast %352 : vector<1x128xf32> to vector<16x128xf32>
    %354 = arith.mulf %351, %353 : vector<16x128xf32>
    %355 = arith.addf %345, %354 : vector<16x128xf32>
    %356 = vector.extract_strided_slice %344 {offsets = [1, 0], sizes = [1, 128], strides = [1, 1]} : vector<9x128xf32> to vector<1x128xf32>
    %357 = vector.broadcast %356 : vector<1x128xf32> to vector<16x128xf32>
    %358 = arith.mulf %347, %357 : vector<16x128xf32>
    %359 = arith.addf %355, %358 : vector<16x128xf32>
    %360 = vector.extract_strided_slice %347 {offsets = [0, 1], sizes = [16, 127], strides = [1, 1]} : vector<16x128xf32> to vector<16x127xf32>
    %361 = tpu.concatenate %360, %1 in 1 : vector<16x127xf32>, vector<16x1xf32> -> vector<16x128xf32>
    %362 = vector.broadcast %26 : vector<1x128xf32> to vector<16x128xf32>
    %363 = arith.mulf %361, %362 : vector<16x128xf32>
    %364 = vector.extract_strided_slice %344 {offsets = [2, 0], sizes = [1, 128], strides = [1, 1]} : vector<9x128xf32> to vector<1x128xf32>
    %365 = vector.broadcast %364 : vector<1x128xf32> to vector<16x128xf32>
    %366 = arith.mulf %363, %365 : vector<16x128xf32>
    %367 = arith.addf %359, %366 : vector<16x128xf32>
    %368 = vector.extract_strided_slice %342 {offsets = [0, 0], sizes = [16, 127], strides = [1, 1]} : vector<16x128xf32> to vector<16x127xf32>
    %369 = tpu.concatenate %1, %368 in 1 : vector<16x1xf32>, vector<16x127xf32> -> vector<16x128xf32>
    %370 = vector.broadcast %22 : vector<1x128xf32> to vector<16x128xf32>
    %371 = arith.mulf %369, %370 : vector<16x128xf32>
    %372 = vector.extract_strided_slice %344 {offsets = [3, 0], sizes = [1, 128], strides = [1, 1]} : vector<9x128xf32> to vector<1x128xf32>
    %373 = vector.broadcast %372 : vector<1x128xf32> to vector<16x128xf32>
    %374 = arith.mulf %371, %373 : vector<16x128xf32>
    %375 = arith.addf %367, %374 : vector<16x128xf32>
    %376 = vector.extract_strided_slice %344 {offsets = [4, 0], sizes = [1, 128], strides = [1, 1]} : vector<9x128xf32> to vector<1x128xf32>
    %377 = vector.broadcast %376 : vector<1x128xf32> to vector<16x128xf32>
    %378 = arith.mulf %342, %377 : vector<16x128xf32>
    %379 = arith.addf %375, %378 : vector<16x128xf32>
    %380 = vector.extract_strided_slice %342 {offsets = [0, 1], sizes = [16, 127], strides = [1, 1]} : vector<16x128xf32> to vector<16x127xf32>
    %381 = tpu.concatenate %380, %1 in 1 : vector<16x127xf32>, vector<16x1xf32> -> vector<16x128xf32>
    %382 = vector.broadcast %26 : vector<1x128xf32> to vector<16x128xf32>
    %383 = arith.mulf %381, %382 : vector<16x128xf32>
    %384 = vector.extract_strided_slice %344 {offsets = [5, 0], sizes = [1, 128], strides = [1, 1]} : vector<9x128xf32> to vector<1x128xf32>
    %385 = vector.broadcast %384 : vector<1x128xf32> to vector<16x128xf32>
    %386 = arith.mulf %383, %385 : vector<16x128xf32>
    %387 = arith.addf %379, %386 : vector<16x128xf32>
    %388 = vector.extract_strided_slice %342 {offsets = [1, 0], sizes = [15, 128], strides = [1, 1]} : vector<16x128xf32> to vector<15x128xf32>
    %389 = tpu.concatenate %388, %0 in 0 : vector<15x128xf32>, vector<1x128xf32> -> vector<16x128xf32>
    %390 = vector.extract_strided_slice %389 {offsets = [0, 0], sizes = [16, 127], strides = [1, 1]} : vector<16x128xf32> to vector<16x127xf32>
    %391 = tpu.concatenate %1, %390 in 1 : vector<16x1xf32>, vector<16x127xf32> -> vector<16x128xf32>
    %392 = vector.broadcast %22 : vector<1x128xf32> to vector<16x128xf32>
    %393 = arith.mulf %391, %392 : vector<16x128xf32>
    %394 = vector.extract_strided_slice %344 {offsets = [6, 0], sizes = [1, 128], strides = [1, 1]} : vector<9x128xf32> to vector<1x128xf32>
    %395 = vector.broadcast %394 : vector<1x128xf32> to vector<16x128xf32>
    %396 = arith.mulf %393, %395 : vector<16x128xf32>
    %397 = arith.addf %387, %396 : vector<16x128xf32>
    %398 = vector.extract_strided_slice %344 {offsets = [7, 0], sizes = [1, 128], strides = [1, 1]} : vector<9x128xf32> to vector<1x128xf32>
    %399 = vector.broadcast %398 : vector<1x128xf32> to vector<16x128xf32>
    %400 = arith.mulf %389, %399 : vector<16x128xf32>
    %401 = arith.addf %397, %400 : vector<16x128xf32>
    %402 = vector.extract_strided_slice %389 {offsets = [0, 1], sizes = [16, 127], strides = [1, 1]} : vector<16x128xf32> to vector<16x127xf32>
    %403 = tpu.concatenate %402, %1 in 1 : vector<16x127xf32>, vector<16x1xf32> -> vector<16x128xf32>
    %404 = vector.broadcast %26 : vector<1x128xf32> to vector<16x128xf32>
    %405 = arith.mulf %403, %404 : vector<16x128xf32>
    %406 = vector.extract_strided_slice %344 {offsets = [8, 0], sizes = [1, 128], strides = [1, 1]} : vector<9x128xf32> to vector<1x128xf32>
    %407 = vector.broadcast %406 : vector<1x128xf32> to vector<16x128xf32>
    %408 = arith.mulf %405, %407 : vector<16x128xf32>
    %409 = arith.addf %401, %408 : vector<16x128xf32>
    %c2_50 = arith.constant 2 : index
    %c0_51 = arith.constant 0 : index
    %410 = vector.load %arg3[%c2_50, %c0_51] : memref<3x128xf32, #tpu.memory_space<vmem>>, vector<1x128xf32>
    %411 = vector.broadcast %410 : vector<1x128xf32> to vector<16x128xf32>
    %412 = arith.addf %409, %411 : vector<16x128xf32>
    %cst_52 = arith.constant 0.000000e+00 : f32
    %413 = vector.broadcast %cst_52 : f32 to vector<16x128xf32>
    %414 = arith.maximumf %412, %413 : vector<16x128xf32>
    %c2_53 = arith.constant 2 : index
    %c0_54 = arith.constant 0 : index
    %c0_55 = arith.constant 0 : index
    %415 = vector.load %arg4[%c2_53, %c0_54, %c0_55] : memref<3x9x128xf32, #tpu.memory_space<vmem>>, vector<1x9x128xf32>
    %416 = vector.shape_cast %415 : vector<1x9x128xf32> to vector<9x128xf32>
    %cst_56 = arith.constant 0.000000e+00 : f32
    %417 = vector.broadcast %cst_56 : f32 to vector<16x128xf32>
    %418 = vector.extract_strided_slice %414 {offsets = [0, 0], sizes = [15, 128], strides = [1, 1]} : vector<16x128xf32> to vector<15x128xf32>
    %419 = tpu.concatenate %0, %418 in 0 : vector<1x128xf32>, vector<15x128xf32> -> vector<16x128xf32>
    %420 = vector.extract_strided_slice %419 {offsets = [0, 0], sizes = [16, 127], strides = [1, 1]} : vector<16x128xf32> to vector<16x127xf32>
    %421 = tpu.concatenate %1, %420 in 1 : vector<16x1xf32>, vector<16x127xf32> -> vector<16x128xf32>
    %422 = vector.broadcast %22 : vector<1x128xf32> to vector<16x128xf32>
    %423 = arith.mulf %421, %422 : vector<16x128xf32>
    %424 = vector.extract_strided_slice %416 {offsets = [0, 0], sizes = [1, 128], strides = [1, 1]} : vector<9x128xf32> to vector<1x128xf32>
    %425 = vector.broadcast %424 : vector<1x128xf32> to vector<16x128xf32>
    %426 = arith.mulf %423, %425 : vector<16x128xf32>
    %427 = arith.addf %417, %426 : vector<16x128xf32>
    %428 = vector.extract_strided_slice %416 {offsets = [1, 0], sizes = [1, 128], strides = [1, 1]} : vector<9x128xf32> to vector<1x128xf32>
    %429 = vector.broadcast %428 : vector<1x128xf32> to vector<16x128xf32>
    %430 = arith.mulf %419, %429 : vector<16x128xf32>
    %431 = arith.addf %427, %430 : vector<16x128xf32>
    %432 = vector.extract_strided_slice %419 {offsets = [0, 1], sizes = [16, 127], strides = [1, 1]} : vector<16x128xf32> to vector<16x127xf32>
    %433 = tpu.concatenate %432, %1 in 1 : vector<16x127xf32>, vector<16x1xf32> -> vector<16x128xf32>
    %434 = vector.broadcast %26 : vector<1x128xf32> to vector<16x128xf32>
    %435 = arith.mulf %433, %434 : vector<16x128xf32>
    %436 = vector.extract_strided_slice %416 {offsets = [2, 0], sizes = [1, 128], strides = [1, 1]} : vector<9x128xf32> to vector<1x128xf32>
    %437 = vector.broadcast %436 : vector<1x128xf32> to vector<16x128xf32>
    %438 = arith.mulf %435, %437 : vector<16x128xf32>
    %439 = arith.addf %431, %438 : vector<16x128xf32>
    %440 = vector.extract_strided_slice %414 {offsets = [0, 0], sizes = [16, 127], strides = [1, 1]} : vector<16x128xf32> to vector<16x127xf32>
    %441 = tpu.concatenate %1, %440 in 1 : vector<16x1xf32>, vector<16x127xf32> -> vector<16x128xf32>
    %442 = vector.broadcast %22 : vector<1x128xf32> to vector<16x128xf32>
    %443 = arith.mulf %441, %442 : vector<16x128xf32>
    %444 = vector.extract_strided_slice %416 {offsets = [3, 0], sizes = [1, 128], strides = [1, 1]} : vector<9x128xf32> to vector<1x128xf32>
    %445 = vector.broadcast %444 : vector<1x128xf32> to vector<16x128xf32>
    %446 = arith.mulf %443, %445 : vector<16x128xf32>
    %447 = arith.addf %439, %446 : vector<16x128xf32>
    %448 = vector.extract_strided_slice %416 {offsets = [4, 0], sizes = [1, 128], strides = [1, 1]} : vector<9x128xf32> to vector<1x128xf32>
    %449 = vector.broadcast %448 : vector<1x128xf32> to vector<16x128xf32>
    %450 = arith.mulf %414, %449 : vector<16x128xf32>
    %451 = arith.addf %447, %450 : vector<16x128xf32>
    %452 = vector.extract_strided_slice %414 {offsets = [0, 1], sizes = [16, 127], strides = [1, 1]} : vector<16x128xf32> to vector<16x127xf32>
    %453 = tpu.concatenate %452, %1 in 1 : vector<16x127xf32>, vector<16x1xf32> -> vector<16x128xf32>
    %454 = vector.broadcast %26 : vector<1x128xf32> to vector<16x128xf32>
    %455 = arith.mulf %453, %454 : vector<16x128xf32>
    %456 = vector.extract_strided_slice %416 {offsets = [5, 0], sizes = [1, 128], strides = [1, 1]} : vector<9x128xf32> to vector<1x128xf32>
    %457 = vector.broadcast %456 : vector<1x128xf32> to vector<16x128xf32>
    %458 = arith.mulf %455, %457 : vector<16x128xf32>
    %459 = arith.addf %451, %458 : vector<16x128xf32>
    %460 = vector.extract_strided_slice %414 {offsets = [1, 0], sizes = [15, 128], strides = [1, 1]} : vector<16x128xf32> to vector<15x128xf32>
    %461 = tpu.concatenate %460, %0 in 0 : vector<15x128xf32>, vector<1x128xf32> -> vector<16x128xf32>
    %462 = vector.extract_strided_slice %461 {offsets = [0, 0], sizes = [16, 127], strides = [1, 1]} : vector<16x128xf32> to vector<16x127xf32>
    %463 = tpu.concatenate %1, %462 in 1 : vector<16x1xf32>, vector<16x127xf32> -> vector<16x128xf32>
    %464 = vector.broadcast %22 : vector<1x128xf32> to vector<16x128xf32>
    %465 = arith.mulf %463, %464 : vector<16x128xf32>
    %466 = vector.extract_strided_slice %416 {offsets = [6, 0], sizes = [1, 128], strides = [1, 1]} : vector<9x128xf32> to vector<1x128xf32>
    %467 = vector.broadcast %466 : vector<1x128xf32> to vector<16x128xf32>
    %468 = arith.mulf %465, %467 : vector<16x128xf32>
    %469 = arith.addf %459, %468 : vector<16x128xf32>
    %470 = vector.extract_strided_slice %416 {offsets = [7, 0], sizes = [1, 128], strides = [1, 1]} : vector<9x128xf32> to vector<1x128xf32>
    %471 = vector.broadcast %470 : vector<1x128xf32> to vector<16x128xf32>
    %472 = arith.mulf %461, %471 : vector<16x128xf32>
    %473 = arith.addf %469, %472 : vector<16x128xf32>
    %474 = vector.extract_strided_slice %461 {offsets = [0, 1], sizes = [16, 127], strides = [1, 1]} : vector<16x128xf32> to vector<16x127xf32>
    %475 = tpu.concatenate %474, %1 in 1 : vector<16x127xf32>, vector<16x1xf32> -> vector<16x128xf32>
    %476 = vector.broadcast %26 : vector<1x128xf32> to vector<16x128xf32>
    %477 = arith.mulf %475, %476 : vector<16x128xf32>
    %478 = vector.extract_strided_slice %416 {offsets = [8, 0], sizes = [1, 128], strides = [1, 1]} : vector<9x128xf32> to vector<1x128xf32>
    %479 = vector.broadcast %478 : vector<1x128xf32> to vector<16x128xf32>
    %480 = arith.mulf %477, %479 : vector<16x128xf32>
    %481 = arith.addf %473, %480 : vector<16x128xf32>
    %482 = vector.extract_strided_slice %481 {offsets = [0, 0], sizes = [16, 64], strides = [1, 1]} : vector<16x128xf32> to vector<16x64xf32>
    %483 = vector.extract_strided_slice %481 {offsets = [0, 64], sizes = [16, 64], strides = [1, 1]} : vector<16x128xf32> to vector<16x64xf32>
    %484 = arith.addf %482, %483 : vector<16x64xf32>
    %485 = vector.extract_strided_slice %484 {offsets = [0, 0], sizes = [16, 32], strides = [1, 1]} : vector<16x64xf32> to vector<16x32xf32>
    %486 = vector.extract_strided_slice %484 {offsets = [0, 32], sizes = [16, 32], strides = [1, 1]} : vector<16x64xf32> to vector<16x32xf32>
    %487 = arith.addf %485, %486 : vector<16x32xf32>
    %488 = vector.extract_strided_slice %487 {offsets = [0, 0], sizes = [16, 16], strides = [1, 1]} : vector<16x32xf32> to vector<16x16xf32>
    %489 = vector.extract_strided_slice %487 {offsets = [0, 16], sizes = [16, 16], strides = [1, 1]} : vector<16x32xf32> to vector<16x16xf32>
    %490 = arith.addf %488, %489 : vector<16x16xf32>
    %c2_57 = arith.constant 2 : index
    %491 = memref.load %arg5[%c2_57] : memref<3xf32, #tpu.memory_space<smem>>
    %492 = vector.broadcast %491 : f32 to vector<16x16xf32>
    %493 = arith.addf %490, %492 : vector<16x16xf32>
    %494 = math.tanh %493 : vector<16x16xf32>
    %c0_58 = arith.constant 0 : index
    %c2_59 = arith.constant 2 : index
    %c0_60 = arith.constant 0 : index
    %c0_61 = arith.constant 0 : index
    %495 = vector.load %arg6[%c0_58, %c2_59, %c0_60, %c0_61] : memref<1x3x16x16xf32, #tpu.memory_space<vmem>>, vector<1x1x16x16xf32>
    %496 = vector.shape_cast %495 : vector<1x1x16x16xf32> to vector<16x16xf32>
    %497 = vector.shape_cast %494 : vector<16x16xf32> to vector<1x1x16x16xf32>
    tpu.vector_store %arg6[%c0_58, %c2_59, %c0_60, %c0_61], %497 {strides = array<i32>} : memref<1x3x16x16xf32, #tpu.memory_space<vmem>>, vector<1x1x16x16xf32>,
    return
  }
  func.func @transform_0(%arg0: i32) -> (i32, i32, i32, i32) {
    %c0_i32 = arith.constant 0 : i32
    %c0_i32_0 = arith.constant 0 : i32
    %c0_i32_1 = arith.constant 0 : i32
    %c0_i32_2 = arith.constant 0 : i32
    return %arg0, %c0_i32, %c0_i32_0, %c0_i32_1 : i32, i32, i32, i32
  }
  func.func @transform_1(%arg0: i32) -> (i32, i32, i32) {
    %c0_i32 = arith.constant 0 : i32
    %c0_i32_0 = arith.constant 0 : i32
    %c0_i32_1 = arith.constant 0 : i32
    %c0_i32_2 = arith.constant 0 : i32
    return %c0_i32, %c0_i32_0, %c0_i32_1 : i32, i32, i32
  }
  func.func @transform_2(%arg0: i32) -> (i32, i32) {
    %c0_i32 = arith.constant 0 : i32
    %c0_i32_0 = arith.constant 0 : i32
    %c0_i32_1 = arith.constant 0 : i32
    return %c0_i32, %c0_i32_0 : i32, i32
  }
  func.func @transform_3(%arg0: i32) -> (i32, i32, i32) {
    %c0_i32 = arith.constant 0 : i32
    %c0_i32_0 = arith.constant 0 : i32
    %c0_i32_1 = arith.constant 0 : i32
    %c0_i32_2 = arith.constant 0 : i32
    return %c0_i32, %c0_i32_0, %c0_i32_1 : i32, i32, i32
  }
  func.func @transform_4(%arg0: i32) -> i32 {
    %c0_i32 = arith.constant 0 : i32
    %c0_i32_0 = arith.constant 0 : i32
    return %c0_i32 : i32
  }
  func.func @transform_5(%arg0: i32) -> (i32, i32, i32, i32) {
    %c0_i32 = arith.constant 0 : i32
    %c0_i32_0 = arith.constant 0 : i32
    %c0_i32_1 = arith.constant 0 : i32
    %c0_i32_2 = arith.constant 0 : i32
    return %arg0, %c0_i32, %c0_i32_0, %c0_i32_1 : i32, i32, i32, i32
  }
}

</mosaic_0001>

<bundles_post_ra>
// kernel: tpu_custom_call.1
= control target key start
LH: loop header
LB: loop body
LE: loop exit
PB: predicated region body
PF: predicated region fallthrough
CT: control target
= control target key end

     0   :  { %10 = vsyncpa [#allocation4], 0  ;;  %s2472_s0 = inlined_call_operand.vmem [shape: f32[2,3,16,128], index: 0, kind: input, shape index: {}]   ;;  %s2473_s1 = inlined_call_operand.vmem [shape: f32[3,9,128], index: 1, kind: input, shape index: {}]   ;;  %s2474_s2 = inlined_call_operand.vmem [shape: f32[3,128], index: 2, kind: input, shape index: {}]   ;;  %s2475_s3 = inlined_call_operand.vmem [shape: f32[3,9,128], index: 3, kind: input, shape index: {}]   ;;  %s2476_s4 = inlined_call_operand.vmem [shape: f32[3], index: 4, kind: input, shape index: {}]   ;;  %s2477_s5 = inlined_call_operand.hbm [shape: f32[2,3,16,16], index: 5, kind: output, shape index: {}]  }
   0x1   :  { %11 = vsyncpa [#allocation3], 0 }
   0x2   :  { %13 = vsyncpa [#allocation3 + $0x1], 0  ;;  %s1638_s18 = smov 0   ;;  %s1640_s19 = smov 0  }
   0x3   :  { %s1642_s20 = smov 0   ;;  %s1644_s21 = smov 0  }
   0x4 LB: > { %s1659_s22 = sadd.s32 4294967295, %s1596_s21   ;;  %s1405_s23 = sadd.s32 4294967294, %s1596_s21   ;;  %s1596_s21 = sphi %s1644_s21, %s2499_s21   ;;  %s1592_s20 = sphi %s1642_s20, %s2498_s20   ;;  %s1588_s19 = sphi %s1640_s19, %s2497_s19   ;;  %s1584_s18 = sphi %s1638_s18, %s2496_s18  }
   0x5   : > { %s1663_s24 = sadd.s32 1, %s1596_s21   ;;  %s136_s25 = sadd.s32 1, %s1592_s20 }
   0x6   : > { %s133_s26 = ssub.s32 %s1596_s21, %s1663_s24  ;;  %p146_p0 = scmp.ne.s32.totalorder %s1592_s20, %s1588_s19 }
   0x7   : > { %p134_p1 = scmp.eq.s32.totalorder %s133_s26, 0  ;;  %p147_p2 = scmp.eq.s32.totalorder %s1659_s22, 1 }
   0x8   : > { %p152_p3 = scmp.ne.s32.totalorder %s1588_s19, %s1584_s18  ;;  %p153_p4 = scmp.eq.s32.totalorder %s1405_s23, 1 }
   0x9   : > { %s1674_s27 = scalar_select %p134_p1, %s1592_s20, %s136_s25  }
   0xa   : > { %p1676_p5 = por %p147_p2, %p146_p0  ;;  %p1680_p6 = por %p153_p4, %p152_p3 }
   0xb   : > { %p1406_p7 = scmp.ge.s32.totalorder %s1596_s21, 1  ;;  %p160_p8 = scmp.lt.s32.totalorder %s1596_s21, 3 }
   0xc   : > { %p1461_p9 = scmp.eq.s32.totalorder %s1659_s22, 0  ;;  %s182_s8 = sshll.u32 %s2476_s4, 4  ;;  %s183_s8 = int_to_ptr.vmem [resolvable:$true] %s182_s8 }
   0xd   : > { %p1687_p10 = pnand %p1406_p7, %p160_p8  ;;  %s1517_s9 = scalar_lea.vmem %s183_s8, 16 }
   0xe   : > { %p1518_p13 = scmp.ne.s32.totalorder %s183_s8, %s1517_s9  ;;  %p1525_p3 = scmp.lt.s32.totalorder %s183_s8, %s183_s8 }
   0xf   : > { %p1453_p11 = pneg %p1687_p10  ;;  %p1526_p4 = scmp.lt.s32.totalorder %s1517_s9, %s1517_s9 }
  0x11   : > { %p1454_p12 = pnand %p1461_p9, %p1453_p11  ;;  %p1527_p7 = por %p1526_p4, %p1525_p3 }
  0x13   : > { %p1519_p0 = pneg %p1454_p12 }
  0x15   : > { %p1520_p1 = pnand %p1519_p0, %p1518_p13 }
  0x17   : > { %p1521_p2 = pneg %p1520_p1 }
  0x19   : > { %p1528_p8 = pnand %p1527_p7, %p1521_p2 }
  0x1b   : > { %1531 = shalt.err (!%p1528_p8)
}
  0x1c   : > { %s1598_s10 = smov [#allocation2]   ;;  %203 = sbr.rel (%p1687_p10) target bundleno = 806 (0x326), region = 40 }
  0x1d   : > { %1456 = dma.vmem_to_smem (!%p1454_p12), %s183_s8, 16, %s1598_s10, [#allocation4]  }
  0x21   : > { %1575 = dma.done.wait (%p1461_p9), [#allocation4], 16  }
  0x22   : > { %1577 = vsyncadd (%p1461_p9), [#allocation4], 4294967280 }
  0x23   : > { %209 = sfence }
  0x24   : > { %p232_p11 = scmp.lt.s32.totalorder %s1659_s22, 1  ;;  %vm263_vm0 = vcmask 1040384   ;;  %s1599_s16 = smov 1   ;;  %vm361_vm1 = vcmask 1046528   ;;  %v237_v30 = vlaneseq  ;;  %v1849_v37 = vld [vmem:[%s2473_s1 + $0x10] sm:$0xff]  ;;  %v1854_v40 = vld [vmem:[%s2473_s1] sm:$0xff] }
  0x25   : > { %s1600_s17 = smov 127   ;;  %v1859_v41 = vld [vmem:[%s2473_s1 + $0x20] sm:$0xff]  ;;  %vm277_vm4 = vcmask 7168   ;;  %v1601_v49 = vmov 0.0   ;;  %vm304_vm5 = vcmask 1039360   ;;  %s1602_s14 = smov 64  }
  0x26   : > { %s233_s11 = scalar_select %p232_p11, %s1659_s22, 1  ;;  %v1841_v31 = vshrl.u32 %v237_v30, 7  ;;  %v238_v32 = vand.u32 127, %v237_v30  ;;  %vm608_vm6 = vcmask 130048  }
  0x27   : > { %s1603_s25 = smov 96   ;;  %s1604_s26 = smov 112  }
  0x28   : > { %s1445_s12 = smul.u32 48, %s233_s11  ;;  %v1844_v35 = vsub.s32 1, %v1841_v31  ;;  %v243_v36 = vand.u32 15, %v238_v32  ;;  %v1868_v47 = vsub.s32 0, %v1841_v31  ;;  %v1871_v48 = vsub.s32 4, %v1841_v31  ;;  %s602_s30 = sld [smem:[#allocation2]] }
  0x29   : > { %v1882_v56 = vsub.s32 2, %v1841_v31  ;;  %s1426_s6 = sld [smem:[#allocation2 + $0x1]]  ;;  %s229_s8 = sand.u32 1, %s1588_s19  }
  0x2a   : > { %s236_s15 = scalar_lea.vmem %s2472_s0, %s1445_s12  ;;  %v647_v42 = vrot.slane %v1849_v37, %v1844_v35  ;;  %vm251_vm2 = vcmp.ge.s32.totalorder %v243_v36, 1  ;;  %vm254_vm3 = vcmp.le.s32.totalorder %v243_v36, 14  ;;  %v293_v43 = vrot.slane %v1854_v40, %v1844_v35  ;;  %s1438_s7 = sld [smem:[#allocation2 + $0x2]] }
  0x2b   : > { %v1709_v0 = vld [vmem:[%s236_s15 + $0x10] sm:$0xff]  ;;  %v1711_v1 = vld [vmem:[%s236_s15] sm:$0xff]  ;;  %v1713_v2 = vld [vmem:[%s236_s15 + $0x18] sm:$0xff]  ;;  %v1000_v46 = vrot.slane %v1859_v41, %v1844_v35  ;;  %v1873_v50 = vsel %vm251_vm2, 1.0, %v1601_v49  ;;  %v1875_v51 = vsel %vm254_vm3, 1.0, %v1601_v49  ;;  %2486 = vst [vmem:[#allocation8_spill] sm:$0xff] %v1882_v56  ;;  %v639_v62 = vrot.slane %v1849_v37, %v1868_v47 }
  0x2c   : > { %v619_v3 = vrot.slane %v1709_v0, 7  ;;  %v264_v4 = vrot.slane %v1711_v1, 7  ;;  %v620_v5 = vrot.slane %v1713_v2, 7  ;;  %v1718_v6 = vld [vmem:[%s236_s15 + $0x8] sm:$0xff]  ;;  %v1721_v8 = vld [vmem:[%s236_s15 + $0x20] sm:$0xff]  ;;  %v362_v19 = vrot.slane %v1711_v1, 1 }
  0x2d   : > { %v265_v7 = vrot.slane %v1718_v6, 7  ;;  %v1723_v9 = vld [vmem:[%s236_s15 + $0x28] sm:$0xff]  ;;  %v972_v14 = vrot.slane %v1721_v8, 7  ;;  %v363_v18 = vrot.slane %v1718_v6, 1  ;;  %v715_v22 = vrot.slane %v1713_v2, 1  ;;  %s1444_s9 = smul.u32 48, %s229_s8 }
  0x2e   : > { %v1726_v10 = vsel %vm263_vm0, 0.0, %v619_v3  ;;  %v1729_v11 = vsel %vm263_vm0, 0.0, %v264_v4  ;;  %v1736_v12 = vsel %vm263_vm0, %v619_v3, %v620_v5  ;;  %v973_v15 = vrot.slane %v1723_v9, 7  ;;  %s1446_s11 = smul.u32 768, %s1659_s22  ;;  %s2432_s22 = scalar_lea.sflag [#allocation3], %s229_s8 }
  0x2f   : > { %626 = vrot.lane.b32.xlu1 %v1726_v10, %s1599_s16  ;;  %271 = vrot.lane.b32.xlu0 %v1729_v11, %s1599_s16  ;;  %v1739_v13 = vsel %vm263_vm0, %v264_v4, %v265_v7  ;;  %v1751_v17 = vsel %vm263_vm0, 0.0, %v972_v14  ;;  %v1796_v20 = vsel %vm361_vm1, %v363_v18, 0.0  ;;  %v1799_v21 = vsel %vm361_vm1, %v362_v19, %v363_v18  ;;  %s231_s10 = scalar_lea.vmem [#allocation5], %s1444_s9  ;;  %s1605_s15 = smov [#allocation5]  }
  0x30   : > { %v1748_v16 = vsel %vm263_vm0, %v972_v14, %v973_v15  ;;  %v714_v23 = vrot.slane %v1709_v0, 1  ;;  %v1808_v24 = vsel %vm361_vm1, %v715_v22, 0.0  ;;  %v1068_v26 = vrot.slane %v1723_v9, 1  ;;  %s2426_s13 = scalar_lea.hbm %s2477_s5, %s1446_s11  ;;  %s1536_s23 = sshll.u32 %s1605_s15, 4  ;;  %s1537_s23 = int_to_ptr.vmem [resolvable:$false] %s1536_s23 }
  0x31   : > { %v1067_v27 = vrot.slane %v1721_v8, 1  ;;  %v648_v52 = vmul.f32 %v647_v42, %v1726_v10  ;;  %v294_v53 = vmul.f32 %v293_v43, %v1729_v11  ;;  %v649_v59 = vmul.f32 %v647_v42, %v1736_v12 }
  0x32   : > { %v1811_v25 = vsel %vm361_vm1, %v714_v23, %v715_v22  ;;  %v1820_v28 = vsel %vm361_vm1, %v1068_v26, 0.0  ;;  %v295_v60 = vmul.f32 %v293_v43, %v1739_v13  ;;  %v1887_v61 = vmul.f32 %v1000_v46, %v1751_v17 }
  0x33   : > { %628 = vrot.lane.b32.xlu1 %v1736_v12, %s1599_s16  ;;  %273 = vrot.lane.b32.xlu0 %v1739_v13, %s1599_s16  ;;  %v1823_v29 = vsel %vm361_vm1, %v1067_v27, %v1068_v26  ;;  %v285_v63 = vrot.slane %v1854_v40, %v1868_v47  ;;  %v1894_v3 = vsub.s32 3, %v1841_v31  ;;  %v338_v4 = vrot.slane %v1854_v40, %v1871_v48 }
  0x34   : > { %v312_v14 = vrot.slane %v1854_v40, %v1882_v56  ;;  %v665_v15 = vrot.slane %v1849_v37, %v1882_v56  ;;  %v1915_v23 = vrot.slane %v1859_v41, %v1882_v56 }
  0x35   : > { %v330_v30 = vrot.slane %v1854_v40, %v1894_v3  ;;  %v683_v32 = vrot.slane %v1849_v37, %v1894_v3  ;;  %v340_v36 = vmul.f32 %v338_v4, %v1718_v6 }
  0x37   : > { %981 = vrot.lane.b32.xlu1 %v1748_v16, %s1599_s16  ;;  %979 = vrot.lane.b32.xlu0 %v1751_v17, %s1599_s16 }
  0x3b   : > { %300 = vrot.lane.b32.xlu1 %v1739_v13, %s1600_s17  ;;  %298 = vrot.lane.b32.xlu0 %v1729_v11, %s1600_s17  ;;  %v992_v13 = vrot.slane %v1859_v41, %v1868_v47 }
  0x3f   : > { %654 = vrot.lane.b32.xlu1 %v1736_v12, %s1600_s17  ;;  %652 = vrot.lane.b32.xlu0 %v1726_v10, %s1600_s17  ;;  %v1903_v12 = vmul.f32 %v1000_v46, %v1748_v16 }
  0x43   : > { %1007 = vrot.lane.b32.xlu1 %v1748_v16, %s1600_s17  ;;  %1005 = vrot.lane.b32.xlu0 %v1751_v17, %s1600_s17  ;;  %v691_v16 = vrot.slane %v1849_v37, %v1871_v48 }
  0x47   : > { %319 = vrot.lane.b32.xlu1 %v1718_v6, %s1599_s16  ;;  %317 = vrot.lane.b32.xlu0 %v1711_v1, %s1599_s16 }
  0x4b   : > { %672 = vrot.lane.b32.xlu1 %v1713_v2, %s1599_s16  ;;  %670 = vrot.lane.b32.xlu0 %v1709_v0, %s1599_s16 }
  0x4f   : > { %1025 = vrot.lane.b32.xlu1 %v1723_v9, %s1599_s16  ;;  %1023 = vrot.lane.b32.xlu0 %v1721_v8, %s1599_s16 }
  0x53   : > { %345 = vrot.lane.b32.xlu1 %v1718_v6, %s1600_s17  ;;  %343 = vrot.lane.b32.xlu0 %v1711_v1, %s1600_s17  ;;  %v1939_v6 = vmul.f32 %v1709_v0, %v691_v16 }
  0x57   : > { %698 = vrot.lane.b32.xlu1 %v1713_v2, %s1600_s17  ;;  %696 = vrot.lane.b32.xlu0 %v1709_v0, %s1600_s17 }
  0x5b   : > { %1051 = vrot.lane.b32.xlu1 %v1723_v9, %s1600_s17  ;;  %1049 = vrot.lane.b32.xlu0 %v1721_v8, %s1600_s17 }
  0x5f   : > { %371 = vrot.lane.b32.xlu1 %v1796_v20, %s1599_s16  ;;  %369 = vrot.lane.b32.xlu0 %v1799_v21, %s1599_s16 }
  0x63   : > { %723 = vrot.lane.b32.xlu1 %v1808_v24, %s1599_s16  ;;  %721 = vrot.lane.b32.xlu0 %v1811_v25, %s1599_s16 }
  0x67   : > { %1076 = vrot.lane.b32.xlu1 %v1820_v28, %s1599_s16  ;;  %1074 = vrot.lane.b32.xlu0 %v1823_v29, %s1599_s16 }
  0x6b   : > { %397 = vrot.lane.b32.xlu1 %v1796_v20, %s1600_s17  ;;  %395 = vrot.lane.b32.xlu0 %v1799_v21, %s1600_s17 }
  0x6f   : > { %749 = vrot.lane.b32.xlu1 %v1808_v24, %s1600_s17  ;;  %747 = vrot.lane.b32.xlu0 %v1811_v25, %s1600_s17 }
  0x73   : > { %1102 = vrot.lane.b32.xlu1 %v1820_v28, %s1600_s17  ;;  %1100 = vrot.lane.b32.xlu0 %v1823_v29, %s1600_s17 }
  0xa1   : > { %v627_v33 = vpop.permute.xlu1 %626  ;;  %v272_v34 = vpop.permute.xlu0 %271 }
  0xa2   : > { %v632_v54 = vsel %vm277_vm4, 0.0, %v627_v33  ;;  %v278_v55 = vsel %vm277_vm4, 0.0, %v272_v34 }
  0xa3   : > { %v634_v5 = vmul.f32 %v1873_v50, %v632_v54  ;;  %v280_v7 = vmul.f32 %v1873_v50, %v278_v55  ;;  %v1933_v55 = vrot.slane %v1859_v41, %v1894_v3 }
  0xa5   : > { %v629_v38 = vpop.permute.xlu1 %628  ;;  %v274_v39 = vpop.permute.xlu0 %273  ;;  %v640_v33 = vmul.f32 %v639_v62, %v634_v5  ;;  %v286_v34 = vmul.f32 %v285_v63, %v280_v7 }
  0xa6   : > { %v633_v10 = vsel %vm277_vm4, 0.0, %v629_v38  ;;  %v279_v11 = vsel %vm277_vm4, 0.0, %v274_v39  ;;  %v339_v38 = vmul.f32 %v338_v4, %v1711_v1  ;;  %v1044_v1 = vrot.slane %v1859_v41, %v1871_v48 }
  0xa7   : > { %v635_v26 = vmul.f32 %v1873_v50, %v633_v10  ;;  %v281_v27 = vmul.f32 %v1873_v50, %v279_v11  ;;  %v650_v10 = vadd.f32 %v648_v52, %v640_v33  ;;  %v296_v11 = vadd.f32 %v294_v53, %v286_v34 }
  0xa9   : > { %v982_v44 = vpop.permute.xlu1 %981  ;;  %v980_v45 = vpop.permute.xlu0 %979  ;;  %v287_v4 = vmul.f32 %v285_v63, %v281_v27 }
  0xaa   : > { %v986_v5 = vsel %vm277_vm4, 0.0, %v982_v44  ;;  %v985_v7 = vsel %vm277_vm4, 0.0, %v980_v45 }
  0xab   : > { %v987_v44 = vmul.f32 %v1873_v50, %v985_v7  ;;  %v297_v63 = vadd.f32 %v295_v60, %v287_v4 }
  0xad   : > { %v301_v57 = vpop.permute.xlu1 %300  ;;  %v299_v58 = vpop.permute.xlu0 %298 }
  0xae   : > { %v306_v19 = vsel %vm304_vm5, %v301_v57, 0.0  ;;  %v305_v22 = vsel %vm304_vm5, %v299_v58, 0.0  ;;  %v1936_v57 = vmul.f32 %v1713_v2, %v691_v16  ;;  %v641_v58 = vmul.f32 %v639_v62, %v635_v26 }
  0xaf   : > { %v308_v39 = vmul.f32 %v1875_v51, %v306_v19  ;;  %v307_v42 = vmul.f32 %v1875_v51, %v305_v22  ;;  %v988_v62 = vmul.f32 %v1873_v50, %v986_v5 }
  0xb0   : > { %v651_v53 = vadd.f32 %v649_v59, %v641_v58 }
  0xb1   : > { %v655_v17 = vpop.permute.xlu1 %654  ;;  %v653_v18 = vpop.permute.xlu0 %652  ;;  %v314_v2 = vmul.f32 %v312_v14, %v308_v39  ;;  %v313_v19 = vmul.f32 %v312_v14, %v307_v42  ;;  %v994_v7 = vmul.f32 %v992_v13, %v988_v62 }
  0xb2   : > { %v659_v43 = vsel %vm304_vm5, %v655_v17, 0.0  ;;  %v658_v46 = vsel %vm304_vm5, %v653_v18, 0.0 }
  0xb3   : > { %v661_v17 = vmul.f32 %v1875_v51, %v659_v43  ;;  %v660_v18 = vmul.f32 %v1875_v51, %v658_v46  ;;  %v316_v42 = vadd.f32 %v314_v2, %v297_v63  ;;  %v315_v43 = vadd.f32 %v313_v19, %v296_v11 }
  0xb5   : > { %v1008_v49 = vpop.permute.xlu1 %1007  ;;  %v1006_v54 = vpop.permute.xlu0 %1005  ;;  %v667_v27 = vmul.f32 %v665_v15, %v661_v17  ;;  %v666_v33 = vmul.f32 %v665_v15, %v660_v18 }
  0xb6   : > { %v1012_v0 = vsel %vm304_vm5, %v1008_v49, 0.0  ;;  %v1011_v22 = vsel %vm304_vm5, %v1006_v54, 0.0 }
  0xb7   : > { %v1014_v34 = vmul.f32 %v1875_v51, %v1012_v0  ;;  %v1013_v39 = vmul.f32 %v1875_v51, %v1011_v22  ;;  %v669_v18 = vadd.f32 %v667_v27, %v651_v53  ;;  %v668_v0 = vadd.f32 %v666_v33, %v650_v10 }
  0xb9   : > { %v320_v16 = vpop.permute.xlu1 %319  ;;  %v318_v56 = vpop.permute.xlu0 %317  ;;  %v1020_v11 = vmul.f32 %v1915_v23, %v1014_v34 }
  0xba   : > { %v324_v45 = vsel %vm277_vm4, 0.0, %v320_v16  ;;  %v323_v52 = vsel %vm277_vm4, 0.0, %v318_v56  ;;  %v993_v56 = vmul.f32 %v992_v13, %v987_v44  ;;  %v1004_v44 = vadd.f32 %v1903_v12, %v994_v7 }
  0xbb   : > { %v326_v26 = vmul.f32 %v1873_v50, %v324_v45  ;;  %v325_v14 = vmul.f32 %v1873_v50, %v323_v52  ;;  %v1996_v7 = vsub.s32 6, %v1841_v31 }
  0xbc   : > { %v1003_v45 = vadd.f32 %v1887_v61, %v993_v56 }
  0xbd   : > { %v332_v46 = vmul.f32 %v330_v30, %v326_v26  ;;  %v331_v49 = vmul.f32 %v330_v30, %v325_v14  ;;  %v673_v54 = vpop.permute.xlu1 %672  ;;  %v671_v5 = vpop.permute.xlu0 %670  ;;  %v1019_v30 = vmul.f32 %v1915_v23, %v1013_v39  ;;  %v1022_v26 = vadd.f32 %v1020_v11, %v1004_v44 }
  0xbe   : > { %v677_v59 = vsel %vm277_vm4, 0.0, %v673_v54  ;;  %v676_v60 = vsel %vm277_vm4, 0.0, %v671_v5 }
  0xbf   : > { %v334_v58 = vadd.f32 %v332_v46, %v316_v42  ;;  %v333_v4 = vadd.f32 %v331_v49, %v315_v43  ;;  %v679_v15 = vmul.f32 %v1873_v50, %v677_v59  ;;  %v678_v17 = vmul.f32 %v1873_v50, %v676_v60 }
  0xc0   : > { %v1021_v14 = vadd.f32 %v1019_v30, %v1003_v45  ;;  %v1980_v42 = vsub.s32 7, %v1841_v31  ;;  %v1983_v49 = vsub.s32 5, %v1841_v31 }
  0xc1   : > { %v685_v2 = vmul.f32 %v683_v32, %v679_v15  ;;  %v684_v19 = vmul.f32 %v683_v32, %v678_v17  ;;  %v1026_v22 = vpop.permute.xlu1 %1025  ;;  %v1024_v13 = vpop.permute.xlu0 %1023  ;;  %v1963_v16 = vadd.f32 %v340_v36, %v334_v58  ;;  %v1965_v62 = vadd.f32 %v339_v38, %v333_v4 }
  0xc2   : > { %v1030_v52 = vsel %vm277_vm4, 0.0, %v1026_v22  ;;  %v1029_v10 = vsel %vm277_vm4, 0.0, %v1024_v13  ;;  %v1046_v36 = vmul.f32 %v1723_v9, %v1044_v1  ;;  %v1045_v38 = vmul.f32 %v1721_v8, %v1044_v1 }
  0xc3   : > { %v687_v53 = vadd.f32 %v685_v2, %v669_v18  ;;  %v686_v63 = vadd.f32 %v684_v19, %v668_v0  ;;  %v1032_v23 = vmul.f32 %v1873_v50, %v1030_v52  ;;  %v1031_v32 = vmul.f32 %v1873_v50, %v1029_v10 }
  0xc4   : > { %v356_v5 = vrot.slane %v1854_v40, %v1983_v49  ;;  %v742_v17 = vrot.slane %v1849_v37, %v1980_v42  ;;  %v709_v31 = vrot.slane %v1849_v37, %v1983_v49  ;;  %v382_v2 = vrot.slane %v1854_v40, %v1996_v7 }
  0xc5   : > { %v1038_v12 = vmul.f32 %v1933_v55, %v1032_v23  ;;  %v1037_v61 = vmul.f32 %v1933_v55, %v1031_v32  ;;  %v346_v27 = vpop.permute.xlu1 %345  ;;  %v344_v33 = vpop.permute.xlu0 %343  ;;  %v695_v34 = vadd.f32 %v1936_v57, %v687_v53  ;;  %v694_v39 = vadd.f32 %v1939_v6, %v686_v63 }
  0xc6   : > { %v350_v55 = vsel %vm304_vm5, %v346_v27, 0.0  ;;  %v349_v57 = vsel %vm304_vm5, %v344_v33, 0.0  ;;  %v390_v6 = vrot.slane %v1854_v40, %v1980_v42  ;;  %v1095_v52 = vrot.slane %v1859_v41, %v1980_v42 }
  0xc7   : > { %v1040_v43 = vadd.f32 %v1038_v12, %v1022_v26  ;;  %v1039_v46 = vadd.f32 %v1037_v61, %v1021_v14  ;;  %v352_v56 = vmul.f32 %v1875_v51, %v350_v55  ;;  %v351_v59 = vmul.f32 %v1875_v51, %v349_v57 }
  0xc8   : > { %v392_v18 = vmul.f32 %v390_v6, %v1796_v20  ;;  %v391_v0 = vmul.f32 %v390_v6, %v1799_v21  ;;  %v744_v21 = vmul.f32 %v742_v17, %v1808_v24  ;;  %v1062_v40 = vrot.slane %v1859_v41, %v1983_v49 }
  0xc9   : > { %v699_v9 = vpop.permute.xlu1 %698  ;;  %v697_v8 = vpop.permute.xlu0 %696  ;;  %v1985_v1 = vadd.f32 %v1046_v36, %v1040_v43  ;;  %v1987_v54 = vadd.f32 %v1045_v38, %v1039_v46  ;;  %v358_v19 = vmul.f32 %v356_v5, %v352_v56  ;;  %v357_v22 = vmul.f32 %v356_v5, %v351_v59 }
  0xca   : > { %v703_v60 = vsel %vm304_vm5, %v699_v9, 0.0  ;;  %v702_v58 = vsel %vm304_vm5, %v697_v8, 0.0  ;;  %v734_v32 = vrot.slane %v1849_v37, %v1996_v7  ;;  %v743_v46 = vmul.f32 %v742_v17, %v1811_v25 }
  0xcb   : > { %v705_v11 = vmul.f32 %v1875_v51, %v703_v60  ;;  %v704_v30 = vmul.f32 %v1875_v51, %v702_v58  ;;  %v360_v38 = vadd.f32 %v358_v19, %v1963_v16  ;;  %v359_v12 = vadd.f32 %v357_v22, %v1965_v62 }
  0xcc   : > { %v1087_v8 = vrot.slane %v1859_v41, %v1996_v7 }
  0xcd   : > { %v1052_v4 = vpop.permute.xlu1 %1051  ;;  %v1050_v15 = vpop.permute.xlu0 %1049  ;;  %v711_v26 = vmul.f32 %v709_v31, %v705_v11  ;;  %v710_v14 = vmul.f32 %v709_v31, %v704_v30 }
  0xce   : > { %v1056_v13 = vsel %vm304_vm5, %v1052_v4, 0.0  ;;  %v1055_v44 = vsel %vm304_vm5, %v1050_v15, 0.0 }
  0xcf   : > { %v1058_v24 = vmul.f32 %v1875_v51, %v1056_v13  ;;  %v1057_v36 = vmul.f32 %v1875_v51, %v1055_v44  ;;  %v713_v62 = vadd.f32 %v711_v26, %v695_v34  ;;  %v712_v5 = vadd.f32 %v710_v14, %v694_v39 }
  0xd0   : > { %v1097_v34 = vmul.f32 %v1095_v52, %v1820_v28  ;;  %v1096_v39 = vmul.f32 %v1095_v52, %v1823_v29 }
  0xd1   : > { %v372_v45 = vpop.permute.xlu1 %371  ;;  %v370_v20 = vpop.permute.xlu0 %369  ;;  %v1064_v56 = vmul.f32 %v1062_v40, %v1058_v24  ;;  %v1063_v59 = vmul.f32 %v1062_v40, %v1057_v36  ;;  %v1415_v24 = vld [vmem:[%s2474_s2] ss:$0 sm:$0xff]  ;;  %v1421_v36 = vld [vmem:[%s2473_s1 + $0x18] ss:$0 sm:$0xff] }
  0xd2   : > { %v376_v10 = vsel %vm277_vm4, 0.0, %v372_v45  ;;  %v375_v53 = vsel %vm277_vm4, 0.0, %v370_v20 }
  0xd3   : > { %v378_v63 = vmul.f32 %v1873_v50, %v376_v10  ;;  %v377_v23 = vmul.f32 %v1873_v50, %v375_v53  ;;  %v1066_v22 = vadd.f32 %v1064_v56, %v1985_v1  ;;  %v1065_v13 = vadd.f32 %v1063_v59, %v1987_v54  ;;  %v1414_v53 = vld [vmem:[%s2473_s1 + $0x8] ss:$0 sm:$0xff] }
  0xd5   : > { %v384_v61 = vmul.f32 %v382_v2, %v378_v63  ;;  %v383_v27 = vmul.f32 %v382_v2, %v377_v23  ;;  %v724_v33 = vpop.permute.xlu1 %723  ;;  %v722_v43 = vpop.permute.xlu0 %721 }
  0xd6   : > { %v728_v9 = vsel %vm277_vm4, 0.0, %v724_v33  ;;  %v727_v37 = vsel %vm277_vm4, 0.0, %v722_v43 }
  0xd7   : > { %v386_v55 = vadd.f32 %v384_v61, %v360_v38  ;;  %v385_v57 = vadd.f32 %v383_v27, %v359_v12  ;;  %v730_v6 = vmul.f32 %v1873_v50, %v728_v9  ;;  %v729_v16 = vmul.f32 %v1873_v50, %v727_v37 }
  0xd9   : > { %v736_v60 = vmul.f32 %v734_v32, %v730_v6  ;;  %v735_v58 = vmul.f32 %v734_v32, %v729_v16  ;;  %v1077_v25 = vpop.permute.xlu1 %1076  ;;  %v1075_v4 = vpop.permute.xlu0 %1074  ;;  %v394_v15 = vadd.f32 %v392_v18, %v386_v55  ;;  %v393_v17 = vadd.f32 %v391_v0, %v385_v57  ;;  %v1422_v6 = vld [vmem:[%s2474_s2 + $0x1] ss:$0 sm:$0xff] }
  0xda   : > { %v1081_v31 = vsel %vm277_vm4, 0.0, %v1077_v25  ;;  %v1080_v41 = vsel %vm277_vm4, 0.0, %v1075_v4 }
  0xdb   : > { %v738_v11 = vadd.f32 %v736_v60, %v713_v62  ;;  %v737_v30 = vadd.f32 %v735_v58, %v712_v5  ;;  %v1083_v2 = vmul.f32 %v1873_v50, %v1081_v31  ;;  %v1082_v19 = vmul.f32 %v1873_v50, %v1080_v41  ;;  %v1433_v58 = vld [vmem:[%s2473_s1 + $0x28] ss:$0 sm:$0xff] }
  0xdd   : > { %v1089_v18 = vmul.f32 %v1087_v8, %v1083_v2  ;;  %v1088_v0 = vmul.f32 %v1087_v8, %v1082_v19  ;;  %v398_v44 = vpop.permute.xlu1 %397  ;;  %v396_v45 = vpop.permute.xlu0 %395  ;;  %v746_v20 = vadd.f32 %v744_v21, %v738_v11  ;;  %v745_v10 = vadd.f32 %v743_v46, %v737_v30 }
  0xde   : > { %v402_v40 = vsel %vm304_vm5, %v398_v44, 0.0  ;;  %v401_v28 = vsel %vm304_vm5, %v396_v45, 0.0  ;;  %v2089_v44 = vld [vmem:[%s2475_s3] sm:$0xff]  ;;  %v2097_v45 = vld [vmem:[%s2475_s3 + $0x10] sm:$0xff] }
  0xdf   : > { %v1091_v63 = vadd.f32 %v1089_v18, %v1066_v22  ;;  %v1090_v29 = vadd.f32 %v1088_v0, %v1065_v13  ;;  %v404_v1 = vmul.f32 %v1875_v51, %v402_v40  ;;  %v403_v54 = vmul.f32 %v1875_v51, %v401_v28  ;;  %v1434_v22 = vld [vmem:[%s2474_s2 + $0x2] ss:$0 sm:$0xff] }
  0xe1   : > { %v410_v52 = vmul.f32 %v1414_v53, %v404_v1  ;;  %v409_v23 = vmul.f32 %v1414_v53, %v403_v54  ;;  %v750_v32 = vpop.permute.xlu1 %749  ;;  %v748_v26 = vpop.permute.xlu0 %747  ;;  %v1099_v21 = vadd.f32 %v1097_v34, %v1091_v63  ;;  %v1098_v14 = vadd.f32 %v1096_v39, %v1090_v29  ;;  %v2109_v29 = vld [vmem:[%s2475_s3 + $0x20] sm:$0xff] }
  0xe2   : > { %v754_v38 = vsel %vm304_vm5, %v750_v32, 0.0  ;;  %v753_v12 = vsel %vm304_vm5, %v748_v26, 0.0  ;;  %v851_v26 = vrot.slane %v2097_v45, %v1871_v48 }
  0xe3   : > { %v412_v61 = vadd.f32 %v410_v52, %v394_v15  ;;  %v411_v27 = vadd.f32 %v409_v23, %v393_v17  ;;  %v756_v33 = vmul.f32 %v1875_v51, %v754_v38  ;;  %v755_v43 = vmul.f32 %v1875_v51, %v753_v12 }
  0xe4   : > { %v498_v52 = vrot.slane %v2089_v44, %v1871_v48 }
  0xe5   : > { %v419_v46 = vadd.f32 %v1415_v24, %v412_v61  ;;  %v418_v9 = vadd.f32 %v1415_v24, %v411_v27  ;;  %v762_v37 = vmul.f32 %v1421_v36, %v756_v33  ;;  %v761_v8 = vmul.f32 %v1421_v36, %v755_v43  ;;  %v1103_v55 = vpop.permute.xlu1 %1102  ;;  %v1101_v57 = vpop.permute.xlu0 %1100 }
  0xe6   : > { %v1107_v16 = vsel %vm304_vm5, %v1103_v55, 0.0  ;;  %v1106_v62 = vsel %vm304_vm5, %v1101_v57, 0.0  ;;  %v1204_v36 = vrot.slane %v2109_v29, %v1871_v48 }
  0xe7   : > { %v2066_v5 = vmax.f32 %v419_v46, 0.0  ;;  %v420_v56 = vmax.f32 %v418_v9, 0.0  ;;  %v764_v59 = vadd.f32 %v762_v37, %v746_v20  ;;  %v763_v60 = vadd.f32 %v761_v8, %v745_v10 }
  0xe8   : > { %v1109_v25 = vmul.f32 %v1875_v51, %v1107_v16  ;;  %v1108_v4 = vmul.f32 %v1875_v51, %v1106_v62 }
  0xe9   : > { %v771_v15 = vadd.f32 %v1422_v6, %v764_v59  ;;  %v770_v17 = vadd.f32 %v1422_v6, %v763_v60  ;;  %477 = vrot.lane.b32.xlu0 %v420_v56, %s1599_s16  ;;  %479 = vrot.lane.b32.xlu1 %v2066_v5, %s1599_s16  ;;  %v426_v31 = vrot.slane %v420_v56, 7  ;;  %v427_v41 = vrot.slane %v2066_v5, 7 }
  0xea   : > { %v1115_v11 = vmul.f32 %v1433_v58, %v1109_v25  ;;  %v1114_v30 = vmul.f32 %v1433_v58, %v1108_v4  ;;  %v521_v2 = vrot.slane %v420_v56, 1  ;;  %v522_v19 = vrot.slane %v2066_v5, 1 }
  0xeb   : > { %v2078_v34 = vmax.f32 %v771_v15, 0.0  ;;  %v772_v39 = vmax.f32 %v770_v17, 0.0  ;;  %v2084_v13 = vsel %vm263_vm0, %v426_v31, %v427_v41  ;;  %v2123_v61 = vmul.f32 %v498_v52, %v420_v56 }
  0xec   : > { %v1117_v18 = vadd.f32 %v1115_v11, %v1099_v21  ;;  %v1116_v0 = vadd.f32 %v1114_v30, %v1098_v14  ;;  %v2101_v53 = vsel %vm361_vm1, %v521_v2, %v522_v19  ;;  %v2126_v27 = vmul.f32 %v498_v52, %v2066_v5 }
  0xed   : > { %830 = vrot.lane.b32.xlu0 %v772_v39, %s1599_s16  ;;  %832 = vrot.lane.b32.xlu1 %v2078_v34, %s1599_s16  ;;  %v779_v20 = vrot.slane %v772_v39, 7  ;;  %v780_v10 = vrot.slane %v2078_v34, 7  ;;  %v874_v1 = vrot.slane %v772_v39, 1  ;;  %v875_v54 = vrot.slane %v2078_v34, 1 }
  0xee   : > { %v1124_v40 = vadd.f32 %v1434_v22, %v1117_v18  ;;  %v1123_v28 = vadd.f32 %v1434_v22, %v1116_v0  ;;  %v2131_v43 = vmul.f32 %v851_v26, %v772_v39  ;;  %v2140_v48 = vmul.f32 %v851_v26, %v2078_v34 }
  0xef   : > { %v2104_v63 = vsel %vm263_vm0, %v779_v20, %v780_v10  ;;  %v2117_v21 = vsel %vm361_vm1, %v874_v1, %v875_v54  ;;  %v431_v8 = vsel %vm263_vm0, 0.0, %v426_v31  ;;  %v784_v55 = vsel %vm263_vm0, 0.0, %v779_v20 }
  0xf0   : > { %v1126_v23 = vmax.f32 %v1124_v40, 0.0  ;;  %v1125_v32 = vmax.f32 %v1123_v28, 0.0  ;;  %v526_v6 = vsel %vm361_vm1, %v522_v19, 0.0  ;;  %v879_v16 = vsel %vm361_vm1, %v875_v54, 0.0 }
  0xf1   : > { %v454_v41 = vrot.slane %v2089_v44, %v1844_v35  ;;  %v549_v11 = vrot.slane %v2089_v44, %v1980_v42  ;;  %v807_v30 = vrot.slane %v2097_v45, %v1844_v35  ;;  %v2217_v22 = vrot.slane %v2109_v29, %v1980_v42 }
  0xf2   : > { %1183 = vrot.lane.b32.xlu0 %v1125_v32, %s1599_s16  ;;  %1185 = vrot.lane.b32.xlu1 %v1126_v23, %s1599_s16  ;;  %v1132_v14 = vrot.slane %v1125_v32, 7  ;;  %v1133_v24 = vrot.slane %v1126_v23, 7  ;;  %v1227_v38 = vrot.slane %v1125_v32, 1  ;;  %v1228_v12 = vrot.slane %v1126_v23, 1 }
  0xf3   : > { %v2142_v9 = vmul.f32 %v1204_v36, %v1125_v32  ;;  %v2144_v37 = vmul.f32 %v1204_v36, %v1126_v23  ;;  %2489 = vst [vmem:[#allocation11_spill] sm:$0xff] %v2217_v22  ;;  %v490_v18 = vrot.slane %v2089_v44, %v1894_v3  ;;  %v843_v0 = vrot.slane %v2097_v45, %v1894_v3 }
  0xf4   : > { %v2129_v33 = vsel %vm263_vm0, %v1132_v14, %v1133_v24  ;;  %v2134_v46 = vsel %vm361_vm1, %v1227_v38, %v1228_v12  ;;  %v1137_v57 = vsel %vm263_vm0, 0.0, %v1132_v14  ;;  %v2181_v62 = vsel %vm361_vm1, %v1228_v12, 0.0 }
  0xf5   : > { %2487 = vst [vmem:[#allocation9_spill] sm:$0xff] %v2134_v46  ;;  %2488 = vst [vmem:[#allocation10_spill] sm:$0xff] %v2181_v62  ;;  %v1196_v20 = vrot.slane %v2109_v29, %v1894_v3  ;;  %v2225_v10 = vmul.f32 %v454_v41, %v431_v8  ;;  %v2231_v40 = vmul.f32 %v549_v11, %v2101_v53 }
  0xf6   : > { %503 = vrot.lane.b32.xlu0 %v420_v56, %s1600_s17  ;;  %505 = vrot.lane.b32.xlu1 %v2066_v5, %s1600_s17  ;;  %v2235_v28 = vmul.f32 %v807_v30, %v784_v55  ;;  %v2238_v1 = vmul.f32 %v807_v30, %v2104_v63  ;;  %v2240_v54 = vmul.f32 %v549_v11, %v526_v6 }
  0xf7   : > { %v2244_v3 = vrot.slane %v2097_v45, %v1983_v49  ;;  %v2270_v12 = vrot.slane %v2109_v29, %v1868_v47 }
  0xfa   : > { %856 = vrot.lane.b32.xlu0 %v772_v39, %s1600_s17  ;;  %858 = vrot.lane.b32.xlu1 %v2078_v34, %s1600_s17  ;;  %v1160_v34 = vrot.slane %v2109_v29, %v1844_v35  ;;  %v902_v39 = vrot.slane %v2097_v45, %v1980_v42  ;;  %v2228_v35 = vmul.f32 %v454_v41, %v2084_v13 }
  0xfb   : > { %v516_v42 = vrot.slane %v2089_v44, %v1983_v49 }
  0xfc   : > { %v2257_v26 = vmul.f32 %v1160_v34, %v1137_v57  ;;  %v2260_v14 = vmul.f32 %v1160_v34, %v2129_v33 }
  0xfe   : > { %1209 = vrot.lane.b32.xlu0 %v1125_v32, %s1600_s17  ;;  %1211 = vrot.lane.b32.xlu1 %v1126_v23, %s1600_s17  ;;  %v2247_v23 = vmul.f32 %v902_v39, %v2117_v21  ;;  %v2253_v32 = vrot.slane %v2109_v29, %v1983_v49  ;;  %v799_v49 = vrot.slane %v2097_v45, %v1868_v47 }
 0x102   : > { %433 = vrot.lane.b32.xlu0 %v431_v8, %s1599_s16  ;;  %435 = vrot.lane.b32.xlu1 %v2084_v13, %s1599_s16 }
 0x106   : > { %786 = vrot.lane.b32.xlu0 %v784_v55, %s1599_s16  ;;  %788 = vrot.lane.b32.xlu1 %v2104_v63, %s1599_s16 }
 0x10a   : > { %1139 = vrot.lane.b32.xlu0 %v1137_v57, %s1599_s16  ;;  %1141 = vrot.lane.b32.xlu1 %v2129_v33, %s1599_s16 }
 0x10e   : > { %459 = vrot.lane.b32.xlu0 %v431_v8, %s1600_s17  ;;  %461 = vrot.lane.b32.xlu1 %v2084_v13, %s1600_s17 }
 0x112   : > { %812 = vrot.lane.b32.xlu0 %v784_v55, %s1600_s17  ;;  %814 = vrot.lane.b32.xlu1 %v2104_v63, %s1600_s17  ;;  %v446_v63 = vrot.slane %v2089_v44, %v1868_v47 }
 0x116   : > { %1165 = vrot.lane.b32.xlu0 %v1137_v57, %s1600_s17  ;;  %1167 = vrot.lane.b32.xlu1 %v2129_v33, %s1600_s17 }
 0x11a   : > { %528 = vrot.lane.b32.xlu0 %v2101_v53, %s1599_s16  ;;  %530 = vrot.lane.b32.xlu1 %v526_v6, %s1599_s16 }
 0x11e   : > { %881 = vrot.lane.b32.xlu0 %v2117_v21, %s1599_s16  ;;  %883 = vrot.lane.b32.xlu1 %v879_v16, %s1599_s16 }
 0x122   : > { %1234 = vrot.lane.b32.xlu0 %v2134_v46, %s1599_s16  ;;  %1236 = vrot.lane.b32.xlu1 %v2181_v62, %s1599_s16  ;;  %s1331_s16 = sshll.u32 %s231_s10, 4  ;;  %s2428_s16 = int_to_ptr.vmem [resolvable:$true] %s1331_s16 }
 0x123   : > { %p1539_p13 = scmp.lt.s32.totalorder %s2428_s16, %s1537_s23 }
 0x126   : > { %554 = vrot.lane.b32.xlu0 %v2101_v53, %s1600_s17  ;;  %556 = vrot.lane.b32.xlu1 %v526_v6, %s1600_s17  ;;  %v2249_v53 = vmul.f32 %v902_v39, %v879_v16  ;;  %v2491_v6 = vld [vmem:[#allocation8_spill] sm:$0xff] }
 0x127   : > { %v2292_v39 = vrot.slane %v2109_v29, %v2491_v6 }
 0x128   : > { %2490 = vst [vmem:[#allocation12_spill] sm:$0xff] %v2249_v53 }
 0x12a   : > { %907 = vrot.lane.b32.xlu0 %v2117_v21, %s1600_s17  ;;  %909 = vrot.lane.b32.xlu1 %v879_v16, %s1600_s17  ;;  %v472_v16 = vrot.slane %v2089_v44, %v2491_v6 }
 0x12e   : > { %1260 = vrot.lane.b32.xlu0 %v2134_v46, %s1600_s17  ;;  %1262 = vrot.lane.b32.xlu1 %v2181_v62, %s1600_s17 }
 0x15b   : > { %v478_v5 = vpop.permute.xlu0 %477  ;;  %v480_v56 = vpop.permute.xlu1 %479 }
 0x15c   : > { %v483_v24 = vsel %vm277_vm4, 0.0, %v478_v5  ;;  %v484_v36 = vsel %vm277_vm4, 0.0, %v480_v56  ;;  %v2278_v5 = vrot.slane %v2097_v45, %v2491_v6 }
 0x15d   : > { %v485_v56 = vmul.f32 %v1873_v50, %v483_v24 }
 0x15f   : > { %v831_v59 = vpop.permute.xlu0 %830  ;;  %v833_v60 = vpop.permute.xlu1 %832  ;;  %v491_v6 = vmul.f32 %v490_v18, %v485_v56 }
 0x160   : > { %v836_v21 = vsel %vm277_vm4, 0.0, %v831_v59  ;;  %v837_v38 = vsel %vm277_vm4, 0.0, %v833_v60  ;;  %v486_v59 = vmul.f32 %v1873_v50, %v484_v36 }
 0x164   : > { %v1184_v58 = vpop.permute.xlu0 %1183  ;;  %v1186_v25 = vpop.permute.xlu1 %1185 }
 0x165   : > { %v1189_v8 = vsel %vm277_vm4, 0.0, %v1184_v58  ;;  %v1190_v33 = vsel %vm277_vm4, 0.0, %v1186_v25  ;;  %v838_v58 = vmul.f32 %v1873_v50, %v836_v21  ;;  %v839_v25 = vmul.f32 %v1873_v50, %v837_v38 }
 0x166   : > { %v1191_v30 = vmul.f32 %v1873_v50, %v1189_v8  ;;  %v1192_v34 = vmul.f32 %v1873_v50, %v1190_v33  ;;  %v2306_v33 = vrot.slane %v2097_v45, %v1996_v7 }
 0x168   : > { %v504_v4 = vpop.permute.xlu0 %503  ;;  %v506_v15 = vpop.permute.xlu1 %505  ;;  %v2312_v62 = vmul.f32 %v1196_v20, %v1191_v30 }
 0x169   : > { %v509_v41 = vsel %vm304_vm5, %v504_v4, 0.0  ;;  %v510_v11 = vsel %vm304_vm5, %v506_v15, 0.0 }
 0x16a   : > { %v511_v38 = vmul.f32 %v1875_v51, %v509_v41  ;;  %v512_v8 = vmul.f32 %v1875_v51, %v510_v11 }
 0x16c   : > { %v2197_v17 = vpop.permute.xlu0 %856  ;;  %v2199_v31 = vpop.permute.xlu1 %858  ;;  %v517_v56 = vmul.f32 %v516_v42, %v511_v38 }
 0x170   : > { %v2207_v2 = vpop.permute.xlu0 %1209  ;;  %v2209_v19 = vpop.permute.xlu1 %1211 }
 0x174   : > { %v434_v52 = vpop.permute.xlu0 %433  ;;  %v436_v13 = vpop.permute.xlu1 %435 }
 0x175   : > { %v439_v47 = vsel %vm277_vm4, 0.0, %v434_v52  ;;  %v440_v60 = vsel %vm277_vm4, 0.0, %v436_v13  ;;  %v2296_v52 = vrot.slane %v2089_v44, %v1996_v7  ;;  %v2310_v44 = vrot.slane %v2109_v29, %v1996_v7 }
 0x176   : > { %v441_v13 = vmul.f32 %v1873_v50, %v439_v47  ;;  %v442_v24 = vmul.f32 %v1873_v50, %v440_v60  ;;  %v492_v47 = vmul.f32 %v490_v18, %v486_v59  ;;  %v844_v60 = vmul.f32 %v843_v0, %v838_v58 }
 0x177   : > { %v518_v18 = vmul.f32 %v516_v42, %v512_v8  ;;  %v863_v58 = vsel %vm304_vm5, %v2199_v31, 0.0 }
 0x178   : > { %v787_v55 = vpop.permute.xlu0 %786  ;;  %v789_v57 = vpop.permute.xlu1 %788  ;;  %v447_v22 = vmul.f32 %v446_v63, %v441_v13  ;;  %v448_v46 = vmul.f32 %v446_v63, %v442_v24  ;;  %v865_v38 = vmul.f32 %v1875_v51, %v863_v58 }
 0x179   : > { %v792_v4 = vsel %vm277_vm4, 0.0, %v787_v55  ;;  %v793_v15 = vsel %vm277_vm4, 0.0, %v789_v57  ;;  %v845_v55 = vmul.f32 %v843_v0, %v839_v25  ;;  %v2314_v57 = vmul.f32 %v1196_v20, %v1192_v34 }
 0x17a   : > { %v794_v41 = vmul.f32 %v1873_v50, %v792_v4  ;;  %v795_v11 = vmul.f32 %v1873_v50, %v793_v15  ;;  %v862_v20 = vsel %vm304_vm5, %v2197_v17, 0.0  ;;  %v457_v24 = vadd.f32 %v2225_v10, %v447_v22 }
 0x17b   : > { %v458_v4 = vadd.f32 %v2228_v35, %v448_v46  ;;  %v864_v31 = vmul.f32 %v1875_v51, %v862_v20 }
 0x17c   : > { %v1140_v36 = vpop.permute.xlu0 %1139  ;;  %v1142_v21 = vpop.permute.xlu1 %1141  ;;  %v800_v30 = vmul.f32 %v799_v49, %v794_v41  ;;  %v801_v34 = vmul.f32 %v799_v49, %v795_v11 }
 0x17d   : > { %v1145_v45 = vsel %vm277_vm4, 0.0, %v1140_v36  ;;  %v1146_v53 = vsel %vm277_vm4, 0.0, %v1142_v21  ;;  %v870_v58 = vmul.f32 %v2244_v3, %v864_v31 }
 0x17e   : > { %v1147_v13 = vmul.f32 %v1873_v50, %v1145_v45  ;;  %v1148_v42 = vmul.f32 %v1873_v50, %v1146_v53  ;;  %v810_v46 = vadd.f32 %v2235_v28, %v800_v30  ;;  %v811_v10 = vadd.f32 %v2238_v1, %v801_v34 }
 0x180   : > { %v460_v7 = vpop.permute.xlu0 %459  ;;  %v462_v29 = vpop.permute.xlu1 %461  ;;  %v1153_v35 = vmul.f32 %v2270_v12, %v1147_v13 }
 0x181   : > { %v465_v0 = vsel %vm304_vm5, %v460_v7, 0.0  ;;  %v466_v59 = vsel %vm304_vm5, %v462_v29, 0.0 }
 0x182   : > { %v467_v63 = vmul.f32 %v1875_v51, %v465_v0  ;;  %v468_v25 = vmul.f32 %v1875_v51, %v466_v59 }
 0x184   : > { %v473_v15 = vmul.f32 %v472_v16, %v467_v63  ;;  %v474_v36 = vmul.f32 %v472_v16, %v468_v25  ;;  %v813_v17 = vpop.permute.xlu0 %812  ;;  %v815_v21 = vpop.permute.xlu1 %814  ;;  %v1154_v16 = vmul.f32 %v2270_v12, %v1148_v42  ;;  %v871_v63 = vmul.f32 %v2244_v3, %v865_v38 }
 0x185   : > { %v818_v8 = vsel %vm304_vm5, %v813_v17, 0.0  ;;  %v819_v49 = vsel %vm304_vm5, %v815_v21, 0.0  ;;  %v1215_v17 = vsel %vm304_vm5, %v2207_v2, 0.0 }
 0x186   : > { %v475_v41 = vadd.f32 %v473_v15, %v457_v24  ;;  %v476_v11 = vadd.f32 %v474_v36, %v458_v4  ;;  %v820_v53 = vmul.f32 %v1875_v51, %v818_v8  ;;  %v821_v22 = vmul.f32 %v1875_v51, %v819_v49 }
 0x188   : > { %v493_v45 = vadd.f32 %v491_v6, %v475_v41  ;;  %v494_v7 = vadd.f32 %v492_v47, %v476_v11  ;;  %v826_v29 = vmul.f32 %v2278_v5, %v820_v53  ;;  %v827_v0 = vmul.f32 %v2278_v5, %v821_v22  ;;  %v1166_v59 = vpop.permute.xlu0 %1165  ;;  %v1168_v20 = vpop.permute.xlu1 %1167 }
 0x189   : > { %v1171_v28 = vsel %vm304_vm5, %v1166_v59, 0.0  ;;  %v1172_v1 = vsel %vm304_vm5, %v1168_v20, 0.0  ;;  %v1163_v47 = vadd.f32 %v2257_v26, %v1153_v35  ;;  %v1164_v5 = vadd.f32 %v2260_v14, %v1154_v16 }
 0x18a   : > { %v828_v25 = vadd.f32 %v826_v29, %v810_v46  ;;  %v829_v30 = vadd.f32 %v827_v0, %v811_v10  ;;  %v1173_v12 = vmul.f32 %v1875_v51, %v1171_v28  ;;  %v1174_v6 = vmul.f32 %v1875_v51, %v1172_v1 }
 0x18b   : > { %v501_v34 = vadd.f32 %v2123_v61, %v493_v45  ;;  %v502_v13 = vadd.f32 %v2126_v27, %v494_v7  ;;  %v1216_v26 = vsel %vm304_vm5, %v2209_v19, 0.0  ;;  %v1217_v22 = vmul.f32 %v1875_v51, %v1215_v17 }
 0x18c   : > { %v846_v42 = vadd.f32 %v844_v60, %v828_v25  ;;  %v847_v3 = vadd.f32 %v845_v55, %v829_v30  ;;  %v1179_v24 = vmul.f32 %v2292_v39, %v1173_v12  ;;  %v1180_v4 = vmul.f32 %v2292_v39, %v1174_v6  ;;  %v529_v15 = vpop.permute.xlu0 %528  ;;  %v531_v36 = vpop.permute.xlu1 %530 }
 0x18d   : > { %v534_v14 = vsel %vm277_vm4, 0.0, %v529_v15  ;;  %v535_v61 = vsel %vm277_vm4, 0.0, %v531_v36  ;;  %v519_v31 = vadd.f32 %v517_v56, %v501_v34  ;;  %v520_v39 = vadd.f32 %v518_v18, %v502_v13  ;;  %v2493_v13 = vld [vmem:[#allocation9_spill] sm:$0xff] }
 0x18e   : > { %v1181_v21 = vadd.f32 %v1179_v24, %v1163_v47  ;;  %v1182_v27 = vadd.f32 %v1180_v4, %v1164_v5  ;;  %v536_v60 = vmul.f32 %v1873_v50, %v534_v14  ;;  %v537_v55 = vmul.f32 %v1873_v50, %v535_v61  ;;  %v2492_v5 = vld [vmem:[#allocation12_spill] sm:$0xff]  ;;  %v2495_v24 = vld [vmem:[#allocation10_spill] sm:$0xff] }
 0x18f   : > { %v854_v38 = vadd.f32 %v2131_v43, %v846_v42  ;;  %v855_v8 = vadd.f32 %v2140_v48, %v847_v3  ;;  %v1218_v46 = vmul.f32 %v1875_v51, %v1216_v26  ;;  %v1223_v28 = vmul.f32 %v2253_v32, %v1217_v22  ;;  %v2494_v42 = vld [vmem:[#allocation11_spill] sm:$0xff] }
 0x190   : > { %v1199_v2 = vadd.f32 %v2312_v62, %v1181_v21  ;;  %v1200_v19 = vadd.f32 %v2314_v57, %v1182_v27  ;;  %v542_v49 = vmul.f32 %v2296_v52, %v536_v60  ;;  %v543_v41 = vmul.f32 %v2296_v52, %v537_v55  ;;  %v882_v11 = vpop.permute.xlu0 %881  ;;  %v884_v53 = vpop.permute.xlu1 %883 }
 0x191   : > { %v887_v56 = vsel %vm277_vm4, 0.0, %v882_v11  ;;  %v888_v43 = vsel %vm277_vm4, 0.0, %v884_v53  ;;  %v872_v10 = vadd.f32 %v870_v58, %v854_v38  ;;  %v873_v35 = vadd.f32 %v871_v63, %v855_v8 }
 0x192   : > { %v544_v18 = vadd.f32 %v542_v49, %v519_v31  ;;  %v545_v48 = vadd.f32 %v543_v41, %v520_v39  ;;  %v889_v62 = vmul.f32 %v1873_v50, %v887_v56  ;;  %v890_v57 = vmul.f32 %v1873_v50, %v888_v43  ;;  %v1425_v31 = vld [vmem:[%s2475_s3 + $0x18] ss:$0 sm:$0xff] }
 0x193   : > { %v1207_v52 = vadd.f32 %v2142_v9, %v1199_v2  ;;  %v1208_v16 = vadd.f32 %v2144_v37, %v1200_v19  ;;  %v1224_v1 = vmul.f32 %v2253_v32, %v1218_v46  ;;  %v1256_v3 = vmul.f32 %v2494_v42, %v2493_v13  ;;  %v1437_v46 = vld [vmem:[%s2475_s3 + $0x28] ss:$0 sm:$0xff] }
 0x194   : > { %v895_v45 = vmul.f32 %v2306_v33, %v889_v62  ;;  %v896_v7 = vmul.f32 %v2306_v33, %v890_v57  ;;  %v1235_v29 = vpop.permute.xlu0 %1234  ;;  %v1237_v0 = vpop.permute.xlu1 %1236  ;;  %v552_v59 = vadd.f32 %v2231_v40, %v544_v18  ;;  %v553_v20 = vadd.f32 %v2240_v54, %v545_v48 }
 0x195   : > { %v1240_v58 = vsel %vm277_vm4, 0.0, %v1235_v29  ;;  %v1241_v9 = vsel %vm277_vm4, 0.0, %v1237_v0  ;;  %v1225_v30 = vadd.f32 %v1223_v28, %v1207_v52  ;;  %v1226_v12 = vadd.f32 %v1224_v1, %v1208_v16 }
 0x196   : > { %v897_v63 = vadd.f32 %v895_v45, %v872_v10  ;;  %v898_v37 = vadd.f32 %v896_v7, %v873_v35  ;;  %v1242_v25 = vmul.f32 %v1873_v50, %v1240_v58  ;;  %v1243_v33 = vmul.f32 %v1873_v50, %v1241_v9  ;;  %v1416_v50 = vld [vmem:[%s2475_s3 + $0x8] ss:$0 sm:$0xff] }
 0x197   : > { %v1257_v4 = vmul.f32 %v2494_v42, %v2495_v24  ;;  %v603_v13 = vstv %s602_s30 }
 0x198   : > { %v1248_v40 = vmul.f32 %v2310_v44, %v1242_v25  ;;  %v1249_v54 = vmul.f32 %v2310_v44, %v1243_v33  ;;  %v555_v6 = vpop.permute.xlu0 %554  ;;  %v557_v47 = vpop.permute.xlu1 %556  ;;  %v905_v32 = vadd.f32 %v2247_v23, %v897_v63  ;;  %v906_v34 = vadd.f32 %v2492_v5, %v898_v37 }
 0x199   : > { %v560_v15 = vsel %vm304_vm5, %v555_v6, 0.0  ;;  %v561_v44 = vsel %vm304_vm5, %v557_v47, 0.0 }
 0x19a   : > { %v1250_v36 = vadd.f32 %v1248_v40, %v1225_v30  ;;  %v1251_v17 = vadd.f32 %v1249_v54, %v1226_v12  ;;  %v562_v23 = vmul.f32 %v1875_v51, %v560_v15  ;;  %v563_v26 = vmul.f32 %v1875_v51, %v561_v44 }
 0x19b   : > { %v956_v44 = vstv %s1426_s6 }
 0x19c   : > { %v568_v14 = vmul.f32 %v1416_v50, %v562_v23  ;;  %v569_v61 = vmul.f32 %v1416_v50, %v563_v26  ;;  %v908_v21 = vpop.permute.xlu0 %907  ;;  %v910_v27 = vpop.permute.xlu1 %909  ;;  %v1258_v60 = vadd.f32 %v1256_v3, %v1250_v36  ;;  %v1259_v55 = vadd.f32 %v1257_v4, %v1251_v17 }
 0x19d   : > { %v913_v39 = vsel %vm304_vm5, %v908_v21, 0.0  ;;  %v914_v38 = vsel %vm304_vm5, %v910_v27, 0.0  ;;  %v1309_v21 = vstv %s1438_s7 }
 0x19e   : > { %v915_v8 = vmul.f32 %v1875_v51, %v913_v39  ;;  %v916_v2 = vmul.f32 %v1875_v51, %v914_v38  ;;  %v570_v19 = vadd.f32 %v568_v14, %v552_v59  ;;  %v571_v49 = vadd.f32 %v569_v61, %v553_v20 }
 0x1a0   : > { %v921_v41 = vmul.f32 %v1425_v31, %v915_v8  ;;  %v922_v11 = vmul.f32 %v1425_v31, %v916_v2  ;;  %v1261_v53 = vpop.permute.xlu0 %1260  ;;  %574 = vrot.lane.b32.xlu0 %v570_v19, %s1602_s14  ;;  %v1263_v22 = vpop.permute.xlu1 %1262  ;;  %576 = vrot.lane.b32.xlu1 %v571_v49, %s1602_s14 }
 0x1a1   : > { %v1266_v56 = vsel %vm304_vm5, %v1261_v53, 0.0  ;;  %v1267_v43 = vsel %vm304_vm5, %v1263_v22, 0.0 }
 0x1a2   : > { %v1268_v18 = vmul.f32 %v1875_v51, %v1266_v56  ;;  %v1269_v48 = vmul.f32 %v1875_v51, %v1267_v43  ;;  %v923_v62 = vadd.f32 %v921_v41, %v905_v32  ;;  %v924_v57 = vadd.f32 %v922_v11, %v906_v34 }
 0x1a4   : > { %v1274_v10 = vmul.f32 %v1437_v46, %v1268_v18  ;;  %v1275_v35 = vmul.f32 %v1437_v46, %v1269_v48  ;;  %927 = vrot.lane.b32.xlu0 %v923_v62, %s1602_s14  ;;  %929 = vrot.lane.b32.xlu1 %v924_v57, %s1602_s14 }
 0x1a6   : > { %v1276_v52 = vadd.f32 %v1274_v10, %v1258_v60  ;;  %v1277_v16 = vadd.f32 %v1275_v35, %v1259_v55 }
 0x1a8   : > { %1280 = vrot.lane.b32.xlu0 %v1276_v52, %s1602_s14  ;;  %1282 = vrot.lane.b32.xlu1 %v1277_v16, %s1602_s14  ;;  %s1532_s14 = scalar_lea.vmem %s2428_s16, 768 }
 0x1a9   : > { %p1533_p9 = scmp.ne.s32.totalorder %s2428_s16, %s1532_s14 }
 0x1ab   : > { %p1534_p10 = pnand %p1533_p9, %p1676_p5 }
 0x1ad   : > { %p1535_p12 = pneg %p1534_p10 }
 0x212   : > { %v575_v45 = vpop.permute.xlu0 %574  ;;  %v577_v7 = vpop.permute.xlu1 %576 }
 0x213   : > { %v580_v29 = vadd.f32 %v575_v45, %v570_v19  ;;  %v581_v0 = vadd.f32 %v577_v7, %v571_v49 }
 0x215   : > { %584 = vrot.lane.b32.xlu0 %v580_v29, %s1603_s25  ;;  %586 = vrot.lane.b32.xlu1 %v581_v0, %s1603_s25 }
 0x216   : > { %v928_v59 = vpop.permute.xlu0 %927  ;;  %v930_v20 = vpop.permute.xlu1 %929 }
 0x217   : > { %v933_v51 = vadd.f32 %v928_v59, %v923_v62  ;;  %v934_v28 = vadd.f32 %v930_v20, %v924_v57 }
 0x219   : > { %937 = vrot.lane.b32.xlu0 %v933_v51, %s1603_s25  ;;  %939 = vrot.lane.b32.xlu1 %v934_v28, %s1603_s25 }
 0x21a   : > { %v1281_v1 = vpop.permute.xlu0 %1280  ;;  %v1283_v58 = vpop.permute.xlu1 %1282 }
 0x21b   : > { %v1286_v9 = vadd.f32 %v1281_v1, %v1276_v52  ;;  %v1287_v63 = vadd.f32 %v1283_v58, %v1277_v16 }
 0x21d   : > { %1290 = vrot.lane.b32.xlu0 %v1286_v9, %s1603_s25  ;;  %1292 = vrot.lane.b32.xlu1 %v1287_v63, %s1603_s25  ;;  %s1538_s25 = scalar_lea.vmem %s1537_s23, 1536 }
 0x21e   : > { %p1540_p0 = scmp.lt.s32.totalorder %s1538_s25, %s1532_s14 }
 0x220   : > { %p1541_p1 = por %p1540_p0, %p1539_p13 }
 0x222   : > { %p1542_p2 = pnand %p1541_p1, %p1535_p12 }
 0x287   : > { %v585_v37 = vpop.permute.xlu0 %584  ;;  %v587_v25 = vpop.permute.xlu1 %586 }
 0x288   : > { %v590_v33 = vadd.f32 %v585_v37, %v580_v29  ;;  %v591_v30 = vadd.f32 %v587_v25, %v581_v0 }
 0x28a   : > { %594 = vrot.lane.b32.xlu0 %v590_v33, %s1604_s26  ;;  %596 = vrot.lane.b32.xlu1 %v591_v30, %s1604_s26 }
 0x28b   : > { %v938_v12 = vpop.permute.xlu0 %937  ;;  %v940_v40 = vpop.permute.xlu1 %939 }
 0x28c   : > { %v943_v54 = vadd.f32 %v938_v12, %v933_v51  ;;  %v944_v6 = vadd.f32 %v940_v40, %v934_v28 }
 0x28e   : > { %947 = vrot.lane.b32.xlu0 %v943_v54, %s1604_s26  ;;  %949 = vrot.lane.b32.xlu1 %v944_v6, %s1604_s26 }
 0x28f   : > { %v1291_v47 = vpop.permute.xlu0 %1290  ;;  %v1293_v32 = vpop.permute.xlu1 %1292 }
 0x290   : > { %v1296_v5 = vadd.f32 %v1291_v47, %v1286_v9  ;;  %v1297_v34 = vadd.f32 %v1293_v32, %v1287_v63 }
 0x292   : > { %1300 = vrot.lane.b32.xlu0 %v1296_v5, %s1604_s26  ;;  %1302 = vrot.lane.b32.xlu1 %v1297_v34, %s1604_s26 }
 0x2fc   : > { %v595_v42 = vpop.permute.xlu0 %594  ;;  %v597_v3 = vpop.permute.xlu1 %596 }
 0x2fd   : > { %v600_v24 = vadd.f32 %v595_v42, %v590_v33  ;;  %v601_v4 = vadd.f32 %v597_v3, %v591_v30 }
 0x2ff   : > { %v604_v50 = vadd.f32 %v603_v13, %v600_v24  ;;  %v605_v15 = vadd.f32 %v603_v13, %v601_v4 }
 0x300   : > { %v948_v36 = vpop.permute.xlu0 %947  ;;  %v950_v17 = vpop.permute.xlu1 %949 }
 0x301   : > { %1505 = vtanh.f32 %v604_v50  ;;  %v953_v23 = vadd.f32 %v948_v36, %v943_v54  ;;  %v954_v26 = vadd.f32 %v950_v17, %v944_v6 }
 0x302   : > { %1507 = vtanh.f32 %v605_v15 }
 0x303   : > { %v957_v14 = vadd.f32 %v956_v44, %v953_v23  ;;  %v958_v61 = vadd.f32 %v956_v44, %v954_v26 }
 0x304   : > { %v1301_v27 = vpop.permute.xlu0 %1300  ;;  %v1303_v60 = vpop.permute.xlu1 %1302 }
 0x305   : > { %1509 = vtanh.f32 %v957_v14  ;;  %v1306_v55 = vadd.f32 %v1301_v27, %v1296_v5  ;;  %v1307_v31 = vadd.f32 %v1303_v60, %v1297_v34 }
 0x306   : > { %1511 = vtanh.f32 %v958_v61 }
 0x307   : > { %v1310_v39 = vadd.f32 %v1309_v21, %v1306_v55  ;;  %v1311_v38 = vadd.f32 %v1309_v21, %v1307_v31 }
 0x309   : > { %1513 = vtanh.f32 %v1310_v39 }
 0x30a   : > { %1515 = vtanh.f32 %v1311_v38 }
 0x30e   : > { %v1506_v8 = vpop.eup %1505 }
 0x30f   : > { %v1508_v2 = vpop.eup %1507  ;;  %609 = vst.msk [vmem:[%s231_s10] sm:$0xff] %vm608_vm6, %v1506_v8 }
 0x310   : > { %610 = vst.msk [vmem:[%s231_s10 + $0x8] sm:$0xff] %vm608_vm6, %v1508_v2 }
 0x312   : > { %v1510_v19 = vpop.eup %1509 }
 0x313   : > { %v1512_v49 = vpop.eup %1511  ;;  %1427 = vst.msk [vmem:[%s231_s10 + $0x10] sm:$0xff] %vm608_vm6, %v1510_v19 }
 0x314   : > { %1428 = vst.msk [vmem:[%s231_s10 + $0x18] sm:$0xff] %vm608_vm6, %v1512_v49 }
 0x316   : > { %v1514_v41 = vpop.eup %1513 }
 0x317   : > { %v1516_v11 = vpop.eup %1515  ;;  %1439 = vst.msk [vmem:[%s231_s10 + $0x20] sm:$0xff] %vm608_vm6, %v1514_v41 }
 0x318   : > { %1440 = vst.msk [vmem:[%s231_s10 + $0x28] sm:$0xff] %vm608_vm6, %v1516_v11 }
 0x319   : > { %1545 = shalt.err (!%p1542_p2)
}
 0x31a   : > { %s1546_s26 = scalar_lea.hbm %s2426_s13, 768  ;;  %s1550_s7 = scalar_lea.hbm %s2477_s5, 1536 }
 0x31b   : > { %p1547_p3 = scmp.ne.s32.totalorder %s2426_s13, %s1546_s26  ;;  %p1551_p8 = scmp.lt.s32.totalorder %s2426_s13, %s2477_s5 }
 0x31c   : > { %p1552_p11 = scmp.lt.s32.totalorder %s1550_s7, %s1546_s26 }
 0x31d   : > { %p1548_p4 = pnand %p1547_p3, %p1676_p5 }
 0x31e   : > { %p1553_p9 = por %p1552_p11, %p1551_p8 }
 0x31f   : > { %p1549_p7 = pneg %p1548_p4 }
 0x321   : > { %p1554_p10 = pnand %p1553_p9, %p1549_p7 }
 0x323   : > { %1557 = shalt.err (!%p1554_p10)
}
 0x324   : > { %s1606_s10 = smov 128   ;;  %s1607_s11 = smov 8  }
 0x325   : > { %1451 = dma.vmem_to_hbm [thread:$0]  (%p1676_p5), %s2428_s16, 768, %s2426_s13, %s2432_s22, %s1606_s10, %s1606_s10, %s1607_s11  }
 0x326 PF: > { %p1463_p12 = scmp.ge.s32.totalorder %s1596_s21, 2  ;;  %s1346_s17 = sand.u32 1, %s1584_s18  }
 0x327   : > { %s1347_s12 = scalar_lea.sflag [#allocation3], %s1346_s17 }
 0x328   : > { %p1458_p13 = pnand %p1463_p12, %p1680_p6 }
 0x32a   : > { %p1459_p0 = pneg %p1458_p13 }
 0x32c   : > { %1579 = dma.done.wait (%p1459_p0), %s1347_s12, 768  }
 0x32d   : > { %1581 = vsyncadd (%p1459_p0), %s1347_s12, 4294966528  ;;  %p16_p1 = scmp.ge.s32.totalorder %s1663_s24, 4   ;;  %s2496_s18 = smov %s1588_s19 }
 0x32e   : > { %s2497_s19 = smov %s1592_s20  ;;  %s2498_s20 = smov %s1674_s27 }
 0x32f   : > { %s2499_s21 = smov %s1663_s24  ;;  %18 = sbr.rel (!%p16_p1) target bundleno = 4 (0x4), region = 88 }
 0x334   :  { %1352 = vsyncpa [#allocation3], 1 }
 0x335   :  { %1354 = vsyncpa [#allocation3 + $0x1], 1 }
 0x336   :  { %1355 = vsyncpa [#allocation4], 1 }
 0x337   :  { %1357 = vsyncpa [#allocation4 + $0x1], 1 }

</bundles_post_ra>
